<compile_context>
chip_gen: v7x
topology: tpu7x:2x2x1
jax: 0.10.0
libtpu: 0.0.40
codegen_flags: <defaults>
</compile_context>

<pallas_src>
import functools

import jax
import jax.numpy as jnp
from jax.experimental import pallas as pl
from jax.experimental.pallas import tpu as pltpu

EPS = 1e-5  # PyTorch InstanceNorm2d default eps


# ----------------------------------------------------------------------------
# Compiler-params helper (per-generation VMEM sizing + parallel batch axis)
# ----------------------------------------------------------------------------
def _vmem_cap_bytes():
    try:
        return int(pltpu.get_tpu_info().vmem_capacity_bytes)
    except Exception:
        return 64 * 1024 * 1024  # conservative: v7x per-core VMEM


_VMEM_CAP = _vmem_cap_bytes()


def _cparams(block_bytes):
    # per-step footprint x double-buffering + headroom for in-kernel
    # temporaries, capped well below physical VMEM (v7x only has 64 MiB/core).
    limit = int(min(max(4 * block_bytes + (8 << 20), 24 << 20),
                    int(0.75 * _VMEM_CAP)))
    return pltpu.CompilerParams(
        dimension_semantics=("parallel",),  # batch items are independent
        vmem_limit_bytes=limit)


def _instance_norm(acc, g, b):
    """acc: (Npix, C) f32; g,b: (1, C) f32.  Biased variance (PyTorch)."""
    mean = jnp.mean(acc, axis=0, keepdims=True)
    cen = acc - mean
    var = jnp.mean(cen * cen, axis=0, keepdims=True)
    return cen * jax.lax.rsqrt(var + EPS) * g + b


# ----------------------------------------------------------------------------
# Generic conv kernel: conv (+bias) (+instance-norm) (+relu)
# Input arrives phase-decomposed: (1, P, Hh, Wh, Cin); taps are static
# (phase, oy, ox) triples so every slice is unit-stride.
# ----------------------------------------------------------------------------
def _conv_kernel(x_ref, w_ref, b_ref, g_ref, be_ref, o_ref, *,
                 taps, Ho, Wo, im2col, add_bias, use_norm, use_relu):
    Cin = x_ref.shape[-1]
    Cout = o_ref.shape[-1]
    T = len(taps)

    xb = x_ref[...].astype(jnp.bfloat16)          # (1, P, Hh, Wh, Cin)
    w = w_ref[...]                                # (T, Cin, Cout) bf16

    if im2col:
        cols = [xb[0, ph, oy:oy + Ho, ox:ox + Wo, :] for (ph, oy, ox) in taps]
        patch = jnp.concatenate(cols, axis=-1).reshape(Ho * Wo, T * Cin)
        acc = jnp.dot(patch, w.reshape(T * Cin, Cout),
                      preferred_element_type=jnp.float32)
    else:
        # tiny-Cin fallback (only conv1, Cin=4): per-tap accumulation
        acc = jnp.zeros((Ho * Wo, Cout), jnp.float32)
        for t, (ph, oy, ox) in enumerate(taps):
            win = xb[0, ph, oy:oy + Ho, ox:ox + Wo, :].reshape(Ho * Wo, Cin)
            acc = acc + jnp.dot(win, w[t], preferred_element_type=jnp.float32)

    if add_bias:
        acc = acc + b_ref[...]
    if use_norm:
        acc = _instance_norm(acc, g_ref[...], be_ref[...])
    if use_relu:
        acc = jnp.maximum(acc, 0.0)

    o_ref[...] = acc.reshape(1, Ho, Wo, Cout).astype(o_ref.dtype)


def conv2d_fused(x, w, bias=None, gamma=None, beta=None, *,
                 stride=1, dilation=1, padding=0,
                 use_norm=False, use_relu=False):
    """x: (N,H,W,Cin) f32 NHWC;  w: (KH,KW,Cin,Cout) HWIO."""
    N, H, W, Cin = x.shape
    KH, KW, _, Cout = w.shape
    s, d = stride, dilation

    # halo pad in the wrapper (cheap XLA glue at these sizes)
    xp = jnp.pad(x, ((0, 0), (padding, padding), (padding, padding), (0, 0)))
    Hp, Wp = xp.shape[1], xp.shape[2]
    Ho = (Hp - d * (KH - 1) - 1) // s + 1
    Wo = (Wp - d * (KW - 1) - 1) // s + 1

    # Phase (space-to-depth) decomposition: the kernel only ever does
    # unit-stride slicing, even for the stride-2 conv.
    Hp_e, Wp_e = pl.cdiv(Hp, s) * s, pl.cdiv(Wp, s) * s
    if (Hp_e, Wp_e) != (Hp, Wp):
        xp = jnp.pad(xp, ((0, 0), (0, Hp_e - Hp), (0, Wp_e - Wp), (0, 0)))
    if s == 1:
        x_ph = xp[:, None]                                   # (N,1,Hp,Wp,Cin)
    else:
        x_ph = jnp.stack([xp[:, py::s, px::s, :]
                          for py in range(s) for px in range(s)], axis=1)
    P, Hh, Wh = x_ph.shape[1], x_ph.shape[2], x_ph.shape[3]

    taps = tuple((((d * ky) % s) * s + ((d * kx) % s),
                  (d * ky) // s, (d * kx) // s)
                 for ky in range(KH) for kx in range(KW))
    T = KH * KW

    # Lane-dense output channels: pad Cout up to a multiple of 128, slice after.
    Cout_p = pl.cdiv(Cout, 128) * 128
    wf = w.reshape(T, Cin, Cout)
    if Cout_p != Cout:
        wf = jnp.pad(wf, ((0, 0), (0, 0), (0, Cout_p - Cout)))
    wf = wf.astype(jnp.bfloat16)

    def cvec(v, default):
        v = default if v is None else v.astype(jnp.float32)
        return jnp.pad(v, (0, Cout_p - Cout)).reshape(1, Cout_p)

    b = cvec(bias, jnp.zeros((Cout,), jnp.float32))
    g = cvec(gamma, jnp.ones((Cout,), jnp.float32))
    be = cvec(beta, jnp.zeros((Cout,), jnp.float32))

    kern = functools.partial(
        _conv_kernel, taps=taps, Ho=Ho, Wo=Wo,
        im2col=(Cin % 128 == 0), add_bias=(bias is not None),
        use_norm=use_norm, use_relu=use_relu)

    blk = (P * Hh * Wh * Cin * 4 + T * Cin * Cout_p * 2
           + 3 * Cout_p * 4 + Ho * Wo * Cout_p * 4)

    out = pl.pallas_call(
        kern,
        out_shape=jax.ShapeDtypeStruct((N, Ho, Wo, Cout_p), jnp.float32),
        grid=(N,),
        in_specs=[
            pl.BlockSpec((1, P, Hh, Wh, Cin), lambda n: (n, 0, 0, 0, 0)),
            pl.BlockSpec((T, Cin, Cout_p), lambda n: (0, 0, 0)),
            pl.BlockSpec((1, Cout_p), lambda n: (0, 0)),
            pl.BlockSpec((1, Cout_p), lambda n: (0, 0)),
            pl.BlockSpec((1, Cout_p), lambda n: (0, 0)),
        ],
        out_specs=pl.BlockSpec((1, Ho, Wo, Cout_p), lambda n: (n, 0, 0, 0)),
        compiler_params=_cparams(blk),
    )(x_ph, wf, b, g, be)

    return out if Cout_p == Cout else out[..., :Cout]


# ----------------------------------------------------------------------------
# Fused ResidualBlock kernel:
#   relu(IN(conv1(x))) -> IN(conv2(.)) -> relu(x + .)   in a single pallas_call
# The intermediate stays in VMEM (values); its halo is built with concatenated
# zero blocks, so nothing round-trips to HBM.
# ----------------------------------------------------------------------------
def _resblock_kernel(x_ref, w1_ref, g1_ref, b1_ref, w2_ref, g2_ref, b2_ref,
                     o_ref, *, d, H, W):
    C = o_ref.shape[-1]
    x = x_ref[...]                                 # (1, H+2d, W+2d, C) f32
    xb = x.astype(jnp.bfloat16)

    def im2col_3x3(src_b):                         # src_b: (H+2d, W+2d, C) bf16
        cols = [src_b[d * ky:d * ky + H, d * kx:d * kx + W, :]
                for ky in range(3) for kx in range(3)]
        return jnp.concatenate(cols, axis=-1).reshape(H * W, 9 * C)

    # conv1 + IN + relu
    a1 = jnp.dot(im2col_3x3(xb[0]), w1_ref[...],
                 preferred_element_type=jnp.float32)
    t = jnp.maximum(_instance_norm(a1, g1_ref[...], b1_ref[...]), 0.0)

    # pad the intermediate by d (halo of zeros) without leaving VMEM
    tb = t.reshape(H, W, C).astype(jnp.bfloat16)
    zrow = jnp.zeros((d, W, C), jnp.bfloat16)
    zcol = jnp.zeros((H + 2 * d, d, C), jnp.bfloat16)
    tp = jnp.concatenate([zrow, tb, zrow], axis=0)
    tp = jnp.concatenate([zcol, tp, zcol], axis=1)

    # conv2 + IN + residual + relu
    a2 = jnp.dot(im2col_3x3(tp), w2_ref[...],
                 preferred_element_type=jnp.float32)
    y = _instance_norm(a2, g2_ref[...], b2_ref[...])
    y = y + x[0, d:d + H, d:d + W, :].reshape(H * W, C)
    y = jnp.maximum(y, 0.0)

    o_ref[...] = y.reshape(1, H, W, C).astype(o_ref.dtype)


def residual_block_fused(x, p, dilation):
    N, H, W, C = x.shape
    d = dilation
    xp = jnp.pad(x, ((0, 0), (d, d), (d, d), (0, 0)))
    w1 = p['w1'].reshape(9 * C, C).astype(jnp.bfloat16)
    w2 = p['w2'].reshape(9 * C, C).astype(jnp.bfloat16)
    g1 = p['g1'].reshape(1, C).astype(jnp.float32)
    b1 = p['b1'].reshape(1, C).astype(jnp.float32)
    g2 = p['g2'].reshape(1, C).astype(jnp.float32)
    b2 = p['b2'].reshape(1, C).astype(jnp.float32)

    kern = functools.partial(_resblock_kernel, d=d, H=H, W=W)
    blk = ((H + 2 * d) * (W + 2 * d) * C * 4 + 2 * 9 * C * C * 2
           + 4 * C * 4 + H * W * C * 4)

    return pl.pallas_call(
        kern,
        out_shape=jax.ShapeDtypeStruct((N, H, W, C), jnp.float32),
        grid=(N,),
        in_specs=[
            pl.BlockSpec((1, H + 2 * d, W + 2 * d, C), lambda n: (n, 0, 0, 0)),
            pl.BlockSpec((9 * C, C), lambda n: (0, 0)),
            pl.BlockSpec((1, C), lambda n: (0, 0)),
            pl.BlockSpec((1, C), lambda n: (0, 0)),
            pl.BlockSpec((9 * C, C), lambda n: (0, 0)),
            pl.BlockSpec((1, C), lambda n: (0, 0)),
            pl.BlockSpec((1, C), lambda n: (0, 0)),
        ],
        out_specs=pl.BlockSpec((1, H, W, C), lambda n: (n, 0, 0, 0)),
        compiler_params=_cparams(blk),
    )(xp, w1, g1, b1, w2, g2, b2)


# ----------------------------------------------------------------------------
# ConvTranspose2d(C, C, 4, stride=2, padding=1) + bias + IN + ReLU as a
# 4-phase sub-pixel conv (each output parity-phase is a 2x2 conv over the
# 1-padded input).  IN stats are taken over all 4 phases jointly.
# ----------------------------------------------------------------------------
_DECONV_TAPS_Y = (((0, 3), (1, 1)),   # output parity 0: (dy in padded x, ky)
                  ((1, 2), (2, 0)))   # output parity 1


def _deconv_kernel(x_ref, w_ref, b_ref, g_ref, be_ref, o_ref, *, taps, H, W):
    Cin = x_ref.shape[-1]
    Cout = o_ref.shape[-1]
    xb = x_ref[...].astype(jnp.bfloat16)          # (1, H+2, W+2, Cin)
    w = w_ref[...]                                 # (4, 4*Cin, Cout) bf16

    accs = []
    for ph in range(4):
        cols = [xb[0, dy:dy + H, dx:dx + W, :] for (dy, dx) in taps[ph]]
        patch = jnp.concatenate(cols, axis=-1).reshape(H * W, 4 * Cin)
        accs.append(jnp.dot(patch, w[ph], preferred_element_type=jnp.float32))

    acc = jnp.concatenate(accs, axis=0) + b_ref[...]       # (4*H*W, Cout)
    acc = _instance_norm(acc, g_ref[...], be_ref[...])     # IN over full map
    acc = jnp.maximum(acc, 0.0)
    o_ref[...] = acc.reshape(1, 4, H, W, Cout).astype(o_ref.dtype)


def conv_transpose2d_fused(x, w_t, bias, gamma, beta):
    """w_t: (Cin, Cout, 4, 4) -- PyTorch ConvTranspose2d weight layout."""
    N, H, W, Cin = x.shape
    Cout = w_t.shape[1]
    assert w_t.shape[2] == 4 and w_t.shape[3] == 4

    xp = jnp.pad(x, ((0, 0), (1, 1), (1, 1), (0, 0)))
    w_hwio = jnp.transpose(w_t, (2, 3, 0, 1))               # (4,4,Cin,Cout)

    w_ph, taps = [], []
    for p in range(2):
        for q in range(2):
            tt = [((dy, dx), (ky, kx))
                  for (dy, ky) in _DECONV_TAPS_Y[p]
                  for (dx, kx) in _DECONV_TAPS_Y[q]]
            taps.append(tuple(dd for dd, _ in tt))
            w_ph.append(jnp.concatenate([w_hwio[ky, kx] for _, (ky, kx) in tt],
                                        axis=0))            # (4*Cin, Cout)
    w_ph = jnp.stack(w_ph, axis=0).astype(jnp.bfloat16)      # (4, 4*Cin, Cout)
    taps = tuple(taps)

    b = bias.reshape(1, Cout).astype(jnp.float32)
    g = gamma.reshape(1, Cout).astype(jnp.float32)
    be = beta.reshape(1, Cout).astype(jnp.float32)

    kern = functools.partial(_deconv_kernel, taps=taps, H=H, W=W)
    blk = ((H + 2) * (W + 2) * Cin * 4 + 16 * Cin * Cout * 2
           + 3 * Cout * 4 + 4 * H * W * Cout * 4)

    out_ph = pl.pallas_call(
        kern,
        out_shape=jax.ShapeDtypeStruct((N, 4, H, W, Cout), jnp.float32),
        grid=(N,),
        in_specs=[
            pl.BlockSpec((1, H + 2, W + 2, Cin), lambda n: (n, 0, 0, 0)),
            pl.BlockSpec((4, 4 * Cin, Cout), lambda n: (0, 0, 0)),
            pl.BlockSpec((1, Cout), lambda n: (0, 0)),
            pl.BlockSpec((1, Cout), lambda n: (0, 0)),
            pl.BlockSpec((1, Cout), lambda n: (0, 0)),
        ],
        out_specs=pl.BlockSpec((1, 4, H, W, Cout), lambda n: (n, 0, 0, 0, 0)),
        compiler_params=_cparams(blk),
    )(xp, w_ph, b, g, be)

    # interleave phases: (N,2,2,H,W,C) -> (N,2H,2W,C)
    out = out_ph.reshape(N, 2, 2, H, W, Cout).transpose(0, 3, 1, 4, 2, 5)
    return out.reshape(N, 2 * H, 2 * W, Cout)


# ----------------------------------------------------------------------------
# HidingRes network (glue around the Pallas kernels)
# ----------------------------------------------------------------------------
def hiding_res_forward(x_nchw, P, only_residual=False):
    x = jnp.transpose(x_nchw, (0, 2, 3, 1)).astype(jnp.float32)   # NCHW -> NHWC
    y = conv2d_fused(x, P['conv1_w'], None, P['norm1_g'], P['norm1_b'],
                     padding=1, use_norm=True, use_relu=True)
    y = conv2d_fused(y, P['conv2_w'], None, P['norm2_g'], P['norm2_b'],
                     padding=1, use_norm=True, use_relu=True)
    y = conv2d_fused(y, P['conv3_w'], None, P['norm3_g'], P['norm3_b'],
                     padding=1, stride=2, use_norm=True, use_relu=True)
    for i, d in enumerate([2, 2, 2, 4, 4, 4, 1], start=1):
        y = residual_block_fused(y, P[f'res{i}'], d)
    y = conv_transpose2d_fused(y, P['deconv3_w'], P['deconv3_b'],
                               P['norm4_g'], P['norm4_b'])
    y = conv2d_fused(y, P['deconv2_w'], P['deconv2_b'],
                     P['norm5_g'], P['norm5_b'],
                     padding=1, use_norm=True, use_relu=True)
    y = conv2d_fused(y, P['deconv1_w'], P['deconv1_b'],
                     padding=0, use_norm=False,
                     use_relu=(not only_residual))
    return jnp.transpose(y, (0, 3, 1, 2))                         # NHWC -> NCHW


# ----------------------------------------------------------------------------
# Deterministic parameter initialization (shapes from the PyTorch __init__)
# ----------------------------------------------------------------------------
def make_params(key, in_c=4, out_c=3):
    keys = iter(jax.random.split(key, 80))
    nk = lambda: next(keys)

    def conv_w(co, ci, k):           # torch OIHW -> HWIO
        w = 0.05 * jax.random.normal(nk(), (co, ci, k, k), jnp.float32)
        return jnp.transpose(w, (2, 3, 1, 0))

    def norm(c):
        g = 1.0 + 0.1 * jax.random.normal(nk(), (c,), jnp.float32)
        b = 0.1 * jax.random.normal(nk(), (c,), jnp.float32)
        return g, b

    P = {}
    P['conv1_w'] = conv_w(128, in_c, 3); P['norm1_g'], P['norm1_b'] = norm(128)
    P['conv2_w'] = conv_w(128, 128, 3);  P['norm2_g'], P['norm2_b'] = norm(128)
    P['conv3_w'] = conv_w(128, 128, 3);  P['norm3_g'], P['norm3_b'] = norm(128)
    for i in range(1, 8):
        g1, b1 = norm(128); g2, b2 = norm(128)
        P[f'res{i}'] = dict(w1=conv_w(128, 128, 3), g1=g1, b1=b1,
                            w2=conv_w(128, 128, 3), g2=g2, b2=b2)
    P['deconv3_w'] = 0.05 * jax.random.normal(nk(), (128, 128, 4, 4), jnp.float32)
    P['deconv3_b'] = 0.05 * jax.random.normal(nk(), (128,), jnp.float32)
    P['norm4_g'], P['norm4_b'] = norm(128)
    P['deconv2_w'] = conv_w(128, 128, 3)
    P['deconv2_b'] = 0.05 * jax.random.normal(nk(), (128,), jnp.float32)
    P['norm5_g'], P['norm5_b'] = norm(128)
    P['deconv1_w'] = conv_w(out_c, 128, 1)
    P['deconv1_b'] = 0.05 * jax.random.normal(nk(), (out_c,), jnp.float32)
    return P


# ----------------------------------------------------------------------------
# Pure-JAX reference for a numerical sanity check.  Conv operands are cast to
# bf16 (accumulate in f32) to mirror the kernel's MXU precision; everything
# else (bias, InstanceNorm, residual, ReLU) is f32, like the kernels.
# ----------------------------------------------------------------------------
def ref_forward(x_nchw, P, only_residual=False):
    x = jnp.transpose(x_nchw, (0, 2, 3, 1)).astype(jnp.float32)

    def conv(x, w, b=None, stride=1, dil=1, pad=0, lhs_dil=1):
        o = jax.lax.conv_general_dilated(
            x.astype(jnp.bfloat16), w.astype(jnp.bfloat16),
            (stride, stride), ((pad, pad), (pad, pad)),
            lhs_dilation=(lhs_dil, lhs_dil), rhs_dilation=(dil, dil),
            dimension_numbers=('NHWC', 'HWIO', 'NHWC'),
            preferred_element_type=jnp.float32)
        return o if b is None else o + b

    def inorm(x, g, b):
        m = jnp.mean(x, axis=(1, 2), keepdims=True)
        v = jnp.mean((x - m) ** 2, axis=(1, 2), keepdims=True)
        return (x - m) * jax.lax.rsqrt(v + EPS) * g + b

    relu = jax.nn.relu
    y = relu(inorm(conv(x, P['conv1_w'], pad=1), P['norm1_g'], P['norm1_b']))
    y = relu(inorm(conv(y, P['conv2_w'], pad=1), P['norm2_g'], P['norm2_b']))
    y = relu(inorm(conv(y, P['conv3_w'], stride=2, pad=1), P['norm3_g'], P['norm3_b']))
    for i, d in enumerate([2, 2, 2, 4, 4, 4, 1], start=1):
        p = P[f'res{i}']
        t = relu(inorm(conv(y, p['w1'], dil=d, pad=d), p['g1'], p['b1']))
        t = inorm(conv(t, p['w2'], dil=d, pad=d), p['g2'], p['b2'])
        y = relu(y + t)
    w_eq = jnp.transpose(P['deconv3_w'], (2, 3, 0, 1))[::-1, ::-1, :, :]
    y = relu(inorm(conv(y, w_eq, P['deconv3_b'], pad=2, lhs_dil=2),
                   P['norm4_g'], P['norm4_b']))
    y = relu(inorm(conv(y, P['deconv2_w'], P['deconv2_b'], pad=1),
                   P['norm5_g'], P['norm5_b']))
    y = conv(y, P['deconv1_w'], P['deconv1_b'])
    if not only_residual:
        y = relu(y)
    return jnp.transpose(y, (0, 3, 1, 2))


if __name__ == "__main__":
    key = jax.random.PRNGKey(0)
    pkey, xkey = jax.random.split(key)
    params = make_params(pkey, in_c=4, out_c=3)
    x = jax.random.normal(xkey, (2, 4, 16, 16), jnp.float32)      # NCHW like PyTorch

    out = jax.block_until_ready(hiding_res_forward(x, params, only_residual=False))
    assert out.shape == (2, 3, 16, 16), out.shape

    ref = jax.block_until_ready(ref_forward(x, params, only_residual=False))
    max_err = float(jnp.max(jnp.abs(out - ref)))
    assert max_err < 2e-2, f"max abs error vs JAX reference: {max_err}"

    print("KERNEL_OK")
</pallas_src>

<mosaic_0001>
module attributes {stable_mosaic.version = 11 : i64} {
  func.func @_conv_kernel(%arg0: i32, %arg1: memref<1x1x18x18x4xf32, #tpu.memory_space<vmem>>, %arg2: memref<9x4x128xbf16, #tpu.memory_space<vmem>>, %arg3: memref<1x128xf32, #tpu.memory_space<vmem>>, %arg4: memref<1x128xf32, #tpu.memory_space<vmem>>, %arg5: memref<1x128xf32, #tpu.memory_space<vmem>>, %arg6: memref<1x16x16x128xf32, #tpu.memory_space<vmem>>) attributes {dimension_semantics = [#tpu.dimension_semantics<parallel>], iteration_bounds = array<i64: 2>, scalar_prefetch = 0 : i64, scratch_operands = 0 : i64, tpu.core_type = #tpu.core_type<tc>, window_params = [{transform_indices = @transform_0, window_bounds = array<i64: 1, 1, 18, 18, 4>}, {pipeline_mode = #tpu.pipeline_mode<synchronous>, transform_indices = @transform_1, window_bounds = array<i64: 9, 4, 128>}, {pipeline_mode = #tpu.pipeline_mode<synchronous>, transform_indices = @transform_2, window_bounds = array<i64: 1, 128>}, {pipeline_mode = #tpu.pipeline_mode<synchronous>, transform_indices = @transform_3, window_bounds = array<i64: 1, 128>}, {pipeline_mode = #tpu.pipeline_mode<synchronous>, transform_indices = @transform_4, window_bounds = array<i64: 1, 128>}, {transform_indices = @transform_5, window_bounds = array<i64: 1, 16, 16, 128>}]} {
    %c0 = arith.constant 0 : index
    %c0_0 = arith.constant 0 : index
    %c0_1 = arith.constant 0 : index
    %c0_2 = arith.constant 0 : index
    %c0_3 = arith.constant 0 : index
    %0 = vector.load %arg1[%c0, %c0_0, %c0_1, %c0_2, %c0_3] : memref<1x1x18x18x4xf32, #tpu.memory_space<vmem>>, vector<1x1x18x18x4xf32>
    %1 = arith.truncf %0 : vector<1x1x18x18x4xf32> to vector<1x1x18x18x4xbf16>
    %c0_4 = arith.constant 0 : index
    %c0_5 = arith.constant 0 : index
    %c0_6 = arith.constant 0 : index
    %2 = vector.load %arg2[%c0_4, %c0_5, %c0_6] : memref<9x4x128xbf16, #tpu.memory_space<vmem>>, vector<9x4x128xbf16>
    %cst = arith.constant 0.000000e+00 : f32
    %3 = vector.broadcast %cst : f32 to vector<256x128xf32>
    %4 = vector.extract_strided_slice %1 {offsets = [0, 0, 0, 0, 0], sizes = [1, 1, 16, 16, 4], strides = [1, 1, 1, 1, 1]} : vector<1x1x18x18x4xbf16> to vector<1x1x16x16x4xbf16>
    %5 = vector.shape_cast %4 : vector<1x1x16x16x4xbf16> to vector<16x16x4xbf16>
    %6 = vector.shape_cast %5 : vector<16x16x4xbf16> to vector<256x4xbf16>
    %7 = vector.extract_strided_slice %2 {offsets = [0, 0, 0], sizes = [1, 4, 128], strides = [1, 1, 1]} : vector<9x4x128xbf16> to vector<1x4x128xbf16>
    %8 = vector.shape_cast %7 : vector<1x4x128xbf16> to vector<4x128xbf16>
    %cst_7 = arith.constant dense<0.000000e+00> : vector<256x128xf32>
    %9 = tpu.matmul %6, %8, %cst_7 {dimension_numbers = #tpu.dot_dimension_numbers<[1], [0], [0], [1], [0, 0, 1, 1], [], []>} : vector<256x4xbf16>, vector<4x128xbf16>, vector<256x128xf32> -> vector<256x128xf32>
    %10 = arith.addf %3, %9 : vector<256x128xf32>
    %11 = vector.extract_strided_slice %1 {offsets = [0, 0, 0, 1, 0], sizes = [1, 1, 16, 16, 4], strides = [1, 1, 1, 1, 1]} : vector<1x1x18x18x4xbf16> to vector<1x1x16x16x4xbf16>
    %12 = vector.shape_cast %11 : vector<1x1x16x16x4xbf16> to vector<16x16x4xbf16>
    %13 = vector.shape_cast %12 : vector<16x16x4xbf16> to vector<256x4xbf16>
    %14 = vector.extract_strided_slice %2 {offsets = [1, 0, 0], sizes = [1, 4, 128], strides = [1, 1, 1]} : vector<9x4x128xbf16> to vector<1x4x128xbf16>
    %15 = vector.shape_cast %14 : vector<1x4x128xbf16> to vector<4x128xbf16>
    %cst_8 = arith.constant dense<0.000000e+00> : vector<256x128xf32>
    %16 = tpu.matmul %13, %15, %cst_8 {dimension_numbers = #tpu.dot_dimension_numbers<[1], [0], [0], [1], [0, 0, 1, 1], [], []>} : vector<256x4xbf16>, vector<4x128xbf16>, vector<256x128xf32> -> vector<256x128xf32>
    %17 = arith.addf %10, %16 : vector<256x128xf32>
    %18 = vector.extract_strided_slice %1 {offsets = [0, 0, 0, 2, 0], sizes = [1, 1, 16, 16, 4], strides = [1, 1, 1, 1, 1]} : vector<1x1x18x18x4xbf16> to vector<1x1x16x16x4xbf16>
    %19 = vector.shape_cast %18 : vector<1x1x16x16x4xbf16> to vector<16x16x4xbf16>
    %20 = vector.shape_cast %19 : vector<16x16x4xbf16> to vector<256x4xbf16>
    %21 = vector.extract_strided_slice %2 {offsets = [2, 0, 0], sizes = [1, 4, 128], strides = [1, 1, 1]} : vector<9x4x128xbf16> to vector<1x4x128xbf16>
    %22 = vector.shape_cast %21 : vector<1x4x128xbf16> to vector<4x128xbf16>
    %cst_9 = arith.constant dense<0.000000e+00> : vector<256x128xf32>
    %23 = tpu.matmul %20, %22, %cst_9 {dimension_numbers = #tpu.dot_dimension_numbers<[1], [0], [0], [1], [0, 0, 1, 1], [], []>} : vector<256x4xbf16>, vector<4x128xbf16>, vector<256x128xf32> -> vector<256x128xf32>
    %24 = arith.addf %17, %23 : vector<256x128xf32>
    %25 = vector.extract_strided_slice %1 {offsets = [0, 0, 1, 0, 0], sizes = [1, 1, 16, 16, 4], strides = [1, 1, 1, 1, 1]} : vector<1x1x18x18x4xbf16> to vector<1x1x16x16x4xbf16>
    %26 = vector.shape_cast %25 : vector<1x1x16x16x4xbf16> to vector<16x16x4xbf16>
    %27 = vector.shape_cast %26 : vector<16x16x4xbf16> to vector<256x4xbf16>
    %28 = vector.extract_strided_slice %2 {offsets = [3, 0, 0], sizes = [1, 4, 128], strides = [1, 1, 1]} : vector<9x4x128xbf16> to vector<1x4x128xbf16>
    %29 = vector.shape_cast %28 : vector<1x4x128xbf16> to vector<4x128xbf16>
    %cst_10 = arith.constant dense<0.000000e+00> : vector<256x128xf32>
    %30 = tpu.matmul %27, %29, %cst_10 {dimension_numbers = #tpu.dot_dimension_numbers<[1], [0], [0], [1], [0, 0, 1, 1], [], []>} : vector<256x4xbf16>, vector<4x128xbf16>, vector<256x128xf32> -> vector<256x128xf32>
    %31 = arith.addf %24, %30 : vector<256x128xf32>
    %32 = vector.extract_strided_slice %1 {offsets = [0, 0, 1, 1, 0], sizes = [1, 1, 16, 16, 4], strides = [1, 1, 1, 1, 1]} : vector<1x1x18x18x4xbf16> to vector<1x1x16x16x4xbf16>
    %33 = vector.shape_cast %32 : vector<1x1x16x16x4xbf16> to vector<16x16x4xbf16>
    %34 = vector.shape_cast %33 : vector<16x16x4xbf16> to vector<256x4xbf16>
    %35 = vector.extract_strided_slice %2 {offsets = [4, 0, 0], sizes = [1, 4, 128], strides = [1, 1, 1]} : vector<9x4x128xbf16> to vector<1x4x128xbf16>
    %36 = vector.shape_cast %35 : vector<1x4x128xbf16> to vector<4x128xbf16>
    %cst_11 = arith.constant dense<0.000000e+00> : vector<256x128xf32>
    %37 = tpu.matmul %34, %36, %cst_11 {dimension_numbers = #tpu.dot_dimension_numbers<[1], [0], [0], [1], [0, 0, 1, 1], [], []>} : vector<256x4xbf16>, vector<4x128xbf16>, vector<256x128xf32> -> vector<256x128xf32>
    %38 = arith.addf %31, %37 : vector<256x128xf32>
    %39 = vector.extract_strided_slice %1 {offsets = [0, 0, 1, 2, 0], sizes = [1, 1, 16, 16, 4], strides = [1, 1, 1, 1, 1]} : vector<1x1x18x18x4xbf16> to vector<1x1x16x16x4xbf16>
    %40 = vector.shape_cast %39 : vector<1x1x16x16x4xbf16> to vector<16x16x4xbf16>
    %41 = vector.shape_cast %40 : vector<16x16x4xbf16> to vector<256x4xbf16>
    %42 = vector.extract_strided_slice %2 {offsets = [5, 0, 0], sizes = [1, 4, 128], strides = [1, 1, 1]} : vector<9x4x128xbf16> to vector<1x4x128xbf16>
    %43 = vector.shape_cast %42 : vector<1x4x128xbf16> to vector<4x128xbf16>
    %cst_12 = arith.constant dense<0.000000e+00> : vector<256x128xf32>
    %44 = tpu.matmul %41, %43, %cst_12 {dimension_numbers = #tpu.dot_dimension_numbers<[1], [0], [0], [1], [0, 0, 1, 1], [], []>} : vector<256x4xbf16>, vector<4x128xbf16>, vector<256x128xf32> -> vector<256x128xf32>
    %45 = arith.addf %38, %44 : vector<256x128xf32>
    %46 = vector.extract_strided_slice %1 {offsets = [0, 0, 2, 0, 0], sizes = [1, 1, 16, 16, 4], strides = [1, 1, 1, 1, 1]} : vector<1x1x18x18x4xbf16> to vector<1x1x16x16x4xbf16>
    %47 = vector.shape_cast %46 : vector<1x1x16x16x4xbf16> to vector<16x16x4xbf16>
    %48 = vector.shape_cast %47 : vector<16x16x4xbf16> to vector<256x4xbf16>
    %49 = vector.extract_strided_slice %2 {offsets = [6, 0, 0], sizes = [1, 4, 128], strides = [1, 1, 1]} : vector<9x4x128xbf16> to vector<1x4x128xbf16>
    %50 = vector.shape_cast %49 : vector<1x4x128xbf16> to vector<4x128xbf16>
    %cst_13 = arith.constant dense<0.000000e+00> : vector<256x128xf32>
    %51 = tpu.matmul %48, %50, %cst_13 {dimension_numbers = #tpu.dot_dimension_numbers<[1], [0], [0], [1], [0, 0, 1, 1], [], []>} : vector<256x4xbf16>, vector<4x128xbf16>, vector<256x128xf32> -> vector<256x128xf32>
    %52 = arith.addf %45, %51 : vector<256x128xf32>
    %53 = vector.extract_strided_slice %1 {offsets = [0, 0, 2, 1, 0], sizes = [1, 1, 16, 16, 4], strides = [1, 1, 1, 1, 1]} : vector<1x1x18x18x4xbf16> to vector<1x1x16x16x4xbf16>
    %54 = vector.shape_cast %53 : vector<1x1x16x16x4xbf16> to vector<16x16x4xbf16>
    %55 = vector.shape_cast %54 : vector<16x16x4xbf16> to vector<256x4xbf16>
    %56 = vector.extract_strided_slice %2 {offsets = [7, 0, 0], sizes = [1, 4, 128], strides = [1, 1, 1]} : vector<9x4x128xbf16> to vector<1x4x128xbf16>
    %57 = vector.shape_cast %56 : vector<1x4x128xbf16> to vector<4x128xbf16>
    %cst_14 = arith.constant dense<0.000000e+00> : vector<256x128xf32>
    %58 = tpu.matmul %55, %57, %cst_14 {dimension_numbers = #tpu.dot_dimension_numbers<[1], [0], [0], [1], [0, 0, 1, 1], [], []>} : vector<256x4xbf16>, vector<4x128xbf16>, vector<256x128xf32> -> vector<256x128xf32>
    %59 = arith.addf %52, %58 : vector<256x128xf32>
    %60 = vector.extract_strided_slice %1 {offsets = [0, 0, 2, 2, 0], sizes = [1, 1, 16, 16, 4], strides = [1, 1, 1, 1, 1]} : vector<1x1x18x18x4xbf16> to vector<1x1x16x16x4xbf16>
    %61 = vector.shape_cast %60 : vector<1x1x16x16x4xbf16> to vector<16x16x4xbf16>
    %62 = vector.shape_cast %61 : vector<16x16x4xbf16> to vector<256x4xbf16>
    %63 = vector.extract_strided_slice %2 {offsets = [8, 0, 0], sizes = [1, 4, 128], strides = [1, 1, 1]} : vector<9x4x128xbf16> to vector<1x4x128xbf16>
    %64 = vector.shape_cast %63 : vector<1x4x128xbf16> to vector<4x128xbf16>
    %cst_15 = arith.constant dense<0.000000e+00> : vector<256x128xf32>
    %65 = tpu.matmul %62, %64, %cst_15 {dimension_numbers = #tpu.dot_dimension_numbers<[1], [0], [0], [1], [0, 0, 1, 1], [], []>} : vector<256x4xbf16>, vector<4x128xbf16>, vector<256x128xf32> -> vector<256x128xf32>
    %66 = arith.addf %59, %65 : vector<256x128xf32>
    %c0_16 = arith.constant 0 : index
    %c0_17 = arith.constant 0 : index
    %67 = vector.load %arg4[%c0_16, %c0_17] : memref<1x128xf32, #tpu.memory_space<vmem>>, vector<1x128xf32>
    %c0_18 = arith.constant 0 : index
    %c0_19 = arith.constant 0 : index
    %68 = vector.load %arg5[%c0_18, %c0_19] : memref<1x128xf32, #tpu.memory_space<vmem>>, vector<1x128xf32>
    %cst_20 = arith.constant dense<0.000000e+00> : vector<128xf32>
    %69 = vector.multi_reduction <add>, %66, %cst_20 [0] : vector<256x128xf32> to vector<128xf32>
    %70 = vector.shape_cast %69 : vector<128xf32> to vector<1x128xf32>
    %cst_21 = arith.constant 2.560000e+02 : f32
    %71 = vector.broadcast %cst_21 : f32 to vector<1x128xf32>
    %72 = arith.divf %70, %71 : vector<1x128xf32>
    %73 = vector.broadcast %72 : vector<1x128xf32> to vector<256x128xf32>
    %74 = arith.subf %66, %73 : vector<256x128xf32>
    %75 = arith.mulf %74, %74 : vector<256x128xf32>
    %cst_22 = arith.constant dense<0.000000e+00> : vector<128xf32>
    %76 = vector.multi_reduction <add>, %75, %cst_22 [0] : vector<256x128xf32> to vector<128xf32>
    %77 = vector.shape_cast %76 : vector<128xf32> to vector<1x128xf32>
    %cst_23 = arith.constant 2.560000e+02 : f32
    %78 = vector.broadcast %cst_23 : f32 to vector<1x128xf32>
    %79 = arith.divf %77, %78 : vector<1x128xf32>
    %cst_24 = arith.constant 9.99999974E-6 : f32
    %80 = vector.broadcast %cst_24 : f32 to vector<1x128xf32>
    %81 = arith.addf %79, %80 : vector<1x128xf32>
    %82 = math.rsqrt %81 : vector<1x128xf32>
    %83 = vector.broadcast %82 : vector<1x128xf32> to vector<256x128xf32>
    %84 = arith.mulf %74, %83 : vector<256x128xf32>
    %85 = vector.broadcast %67 : vector<1x128xf32> to vector<256x128xf32>
    %86 = arith.mulf %84, %85 : vector<256x128xf32>
    %87 = vector.broadcast %68 : vector<1x128xf32> to vector<256x128xf32>
    %88 = arith.addf %86, %87 : vector<256x128xf32>
    %cst_25 = arith.constant 0.000000e+00 : f32
    %89 = vector.broadcast %cst_25 : f32 to vector<256x128xf32>
    %90 = arith.maximumf %88, %89 : vector<256x128xf32>
    %91 = vector.shape_cast %90 : vector<256x128xf32> to vector<1x16x16x128xf32>
    %c0_26 = arith.constant 0 : index
    %c0_27 = arith.constant 0 : index
    %c0_28 = arith.constant 0 : index
    %c0_29 = arith.constant 0 : index
    %92 = vector.load %arg6[%c0_26, %c0_27, %c0_28, %c0_29] : memref<1x16x16x128xf32, #tpu.memory_space<vmem>>, vector<1x16x16x128xf32>
    tpu.vector_store %arg6[%c0_26, %c0_27, %c0_28, %c0_29], %91 {strides = array<i32>} : memref<1x16x16x128xf32, #tpu.memory_space<vmem>>, vector<1x16x16x128xf32>,
    return
  }
  func.func @transform_0(%arg0: i32) -> (i32, i32, i32, i32, i32) {
    %c0_i32 = arith.constant 0 : i32
    %c0_i32_0 = arith.constant 0 : i32
    %c0_i32_1 = arith.constant 0 : i32
    %c0_i32_2 = arith.constant 0 : i32
    %c0_i32_3 = arith.constant 0 : i32
    return %arg0, %c0_i32, %c0_i32_0, %c0_i32_1, %c0_i32_2 : i32, i32, i32, i32, i32
  }
  func.func @transform_1(%arg0: i32) -> (i32, i32, i32) {
    %c0_i32 = arith.constant 0 : i32
    %c0_i32_0 = arith.constant 0 : i32
    %c0_i32_1 = arith.constant 0 : i32
    %c0_i32_2 = arith.constant 0 : i32
    return %c0_i32, %c0_i32_0, %c0_i32_1 : i32, i32, i32
  }
  func.func @transform_2(%arg0: i32) -> (i32, i32) {
    %c0_i32 = arith.constant 0 : i32
    %c0_i32_0 = arith.constant 0 : i32
    %c0_i32_1 = arith.constant 0 : i32
    return %c0_i32, %c0_i32_0 : i32, i32
  }
  func.func @transform_3(%arg0: i32) -> (i32, i32) {
    %c0_i32 = arith.constant 0 : i32
    %c0_i32_0 = arith.constant 0 : i32
    %c0_i32_1 = arith.constant 0 : i32
    return %c0_i32, %c0_i32_0 : i32, i32
  }
  func.func @transform_4(%arg0: i32) -> (i32, i32) {
    %c0_i32 = arith.constant 0 : i32
    %c0_i32_0 = arith.constant 0 : i32
    %c0_i32_1 = arith.constant 0 : i32
    return %c0_i32, %c0_i32_0 : i32, i32
  }
  func.func @transform_5(%arg0: i32) -> (i32, i32, i32, i32) {
    %c0_i32 = arith.constant 0 : i32
    %c0_i32_0 = arith.constant 0 : i32
    %c0_i32_1 = arith.constant 0 : i32
    %c0_i32_2 = arith.constant 0 : i32
    return %arg0, %c0_i32, %c0_i32_0, %c0_i32_1 : i32, i32, i32, i32
  }
}

</mosaic_0001>

<bundles_post_ra>
// kernel: tpu_custom_call.1
= control target key start
LH: loop header
LB: loop body
LE: loop exit
PB: predicated region body
PF: predicated region fallthrough
CT: control target
= control target key end

     0   :  { %10 = vsyncpa [#allocation3], 0  ;;  %s5049_s0 = inlined_call_operand.vmem [shape: f32[2,1,18,18,4], index: 0, kind: input, shape index: {}]   ;;  %s5050_s1 = inlined_call_operand.vmem [shape: bf16[9,4,128], index: 1, kind: input, shape index: {}]   ;;  %s5051_s2 = inlined_call_operand.vmem [shape: f32[1,128], index: 2, kind: input, shape index: {}]   ;;  %s5052_s3 = inlined_call_operand.vmem [shape: f32[1,128], index: 3, kind: input, shape index: {}]   ;;  %s5053_s4 = inlined_call_operand.vmem [shape: f32[1,128], index: 4, kind: input, shape index: {}]   ;;  %s5054_s5 = inlined_call_operand.hbm [shape: f32[2,16,16,128], index: 5, kind: output, shape index: {}]  }
   0x1   :  { %12 = vsyncpa [#allocation3 + $0x1], 0  ;;  %s3896_s18 = smov 0   ;;  %s3898_s19 = smov 0  }
   0x2   :  { %s3900_s20 = smov 0   ;;  %s3902_s21 = smov 0  }
   0x3 LB: > { %s3917_s2 = sadd.s32 4294967295, %s3861_s21   ;;  %s2870_s22 = sadd.s32 4294967294, %s3861_s21   ;;  %s3861_s21 = sphi %s3902_s21, %s5064_s21   ;;  %s3857_s20 = sphi %s3900_s20, %s5063_s20   ;;  %s3853_s19 = sphi %s3898_s19, %s5062_s19   ;;  %s3849_s18 = sphi %s3896_s18, %s5061_s18  }
   0x4   : > { %s3921_s23 = sadd.s32 1, %s3861_s21   ;;  %s135_s24 = sadd.s32 1, %s3857_s20 }
   0x5   : > { %s132_s25 = ssub.s32 %s3861_s21, %s3921_s23  ;;  %p145_p0 = scmp.ne.s32.totalorder %s3857_s20, %s3853_s19 }
   0x6   : > { %p133_p1 = scmp.eq.s32.totalorder %s132_s25, 0  ;;  %p146_p2 = scmp.eq.s32.totalorder %s3917_s2, 1 }
   0x7   : > { %p151_p3 = scmp.ne.s32.totalorder %s3853_s19, %s3849_s18  ;;  %p152_p4 = scmp.eq.s32.totalorder %s2870_s22, 1 }
   0x8   : > { %s3932_s26 = scalar_select %p133_p1, %s3857_s20, %s135_s24  }
   0x9   : > { %p3934_p5 = por %p146_p2, %p145_p0  ;;  %p3938_p6 = por %p152_p4, %p151_p3 }
   0xa   : > { %p2873_p7 = scmp.ge.s32.totalorder %s3861_s21, 1  ;;  %p190_p8 = scmp.lt.s32.totalorder %s3861_s21, 3 }
   0xc   : > { %p191_p9 = pnand %p2873_p7, %p190_p8 }
   0xe   : > { %194 = sbr.rel (%p191_p9) target bundleno = 712 (0x2c8), region = 40 }
  0x15   : > { %v315_v0 = vld [vmem:[%s5050_s1 + $0x2] sm:$0x3]  ;;  %vm565_vm0 = vcmask 1041408   ;;  %v3950_v1 = vld [vmem:[%s5050_s1 + $0x8] sm:$0x3]  ;;  %p218_p10 = scmp.lt.s32.totalorder %s3917_s2, 1 }
  0x16   : > { %3745 = vmatprep.subr.msk.bf16.mxu1 %vm565_vm0, %v315_v0  ;;  %3749 = vmatprep.subr.msk.bf16.mxu0 %vm565_vm0, %v3950_v1  ;;  %v567_v2 = vsel %vm565_vm0, %v315_v0, 0  ;;  %v3959_v3 = vsel %vm565_vm0, %v3950_v1, 0  ;;  %v314_v4 = vld [vmem:[%s5050_s1] sm:$0x3]  ;;  %v319_v5 = vld [vmem:[%s5050_s1 + $0xa] sm:$0x3] }
  0x17   : > { %3182 = vmatpush3.bf16.msra.mxu1 %v567_v2  ;;  %3318 = vmatpush3.bf16.msra.mxu0 %v3959_v3  ;;  %s219_s8 = scalar_select %p218_p10, %s3917_s2, 1  ;;  %vm323_vm1 = vsmask.f32 7424  ;;  %vm516_vm2 = vcmask 31744   ;;  %v763_v16 = vsel %vm565_vm0, %v314_v4, 0  ;;  %v1669_v41 = vsel %vm565_vm0, %v319_v5, 0 }
  0x18   : > { %3746 = vmatprep.subr.msk.bf16.mxu1 %vm565_vm0, %v314_v4  ;;  %3751 = vmatprep.subr.msk.bf16.mxu0 %vm565_vm0, %v319_v5  ;;  %v4038_v63 = vld [vmem:[%s5050_s1 + $0xc] sm:$0x3]  ;;  %vm958_vm3 = vcmask 1046528   ;;  %s215_s10 = sand.u32 1, %s3853_s19   ;;  %s3027_s17 = sshll.u32 %s3917_s2, 12 }
  0x19   : > { %s3755_s13 = smul.u32 432, %s219_s8  ;;  %s2874_s15 = sshll.u32 %s215_s10, 8 }
  0x1a   : > { %s4986_s25 = scalar_lea.hbm %s5054_s5, %s3027_s17  ;;  %s5008_s29 = scalar_lea.sflag [#allocation3], %s215_s10 }
  0x1b   : > { %s3974_s16 = scalar_lea.vmem %s5049_s0, %s3755_s13  ;;  %s3863_s6 = smov [#allocation2]  }
  0x1c   : > { %v224_v6 = vld [vmem:[%s3974_s16] sm:$0xff]  ;;  %v225_v7 = vld [vmem:[%s3974_s16 + $0x8] sm:$0xff]  ;;  %v226_v8 = vld [vmem:[%s3974_s16 + $0x10] sm:$0x3]  ;;  %s3803_s7 = sshll.u32 %s3863_s6, 4  ;;  %s3804_s7 = int_to_ptr.vmem [resolvable:$false] %s3803_s7 }
  0x1d   : > { %v3979_v9 = vpack.c.bf16 %v225_v7, %v224_v6  ;;  %v3981_v10 = vpack.c.bf16 %v226_v8, %v226_v8  ;;  %v227_v11 = vld [vmem:[%s3974_s16 + $0x18] sm:$0xff]  ;;  %v228_v12 = vld [vmem:[%s3974_s16 + $0x20] sm:$0xff]  ;;  %v229_v13 = vld [vmem:[%s3974_s16 + $0x28] sm:$0x3]  ;;  %s3805_s8 = scalar_lea.vmem %s3804_s7, 8192 }
  0x1e   : > { %v3986_v14 = vpack.c.bf16 %v228_v12, %v227_v11  ;;  %v3988_v15 = vpack.c.bf16 %v229_v13, %v229_v13  ;;  %v230_v17 = vld [vmem:[%s3974_s16 + $0x30] sm:$0xff]  ;;  %v231_v18 = vld [vmem:[%s3974_s16 + $0x38] sm:$0xff]  ;;  %v232_v19 = vld [vmem:[%s3974_s16 + $0x40] sm:$0x3] }
  0x1f   : > { %v325_v20 = vshrl.u32 %v3979_v9, 16  ;;  %v327_v21 = vshll.u32 %v3979_v9, 16  ;;  %v332_v22 = vshll.u32 %v3981_v10, 16  ;;  %v3997_v23 = vpack.c.bf16 %v231_v18, %v230_v17  ;;  %v233_v24 = vld [vmem:[%s3974_s16 + $0x48] sm:$0xff]  ;;  %v234_v25 = vld [vmem:[%s3974_s16 + $0x50] sm:$0xff]  ;;  %v236_v26 = vld [vmem:[%s3974_s16 + $0x60] sm:$0xff] }
  0x20   : > { %v337_v27 = vshrl.u32 %v3986_v14, 16  ;;  %v339_v28 = vshll.u32 %v3986_v14, 16  ;;  %v344_v29 = vshll.u32 %v3988_v15, 16  ;;  %v4005_v30 = vpack.c.bf16 %v232_v19, %v232_v19  ;;  %v235_v31 = vld [vmem:[%s3974_s16 + $0x58] sm:$0x3]  ;;  %v237_v32 = vld [vmem:[%s3974_s16 + $0x68] sm:$0xff] }
  0x21   : > { %v329_v33 = vrot.slane %v327_v21, 1  ;;  %v334_v34 = vrot.slane %v332_v22, 1  ;;  %v349_v35 = vshrl.u32 %v3997_v23, 16  ;;  %v351_v36 = vshll.u32 %v3997_v23, 16  ;;  %v238_v37 = vld [vmem:[%s3974_s16 + $0x70] sm:$0x3] }
  0x22   : > { %v341_v38 = vrot.slane %v339_v28, 1  ;;  %v346_v39 = vrot.slane %v344_v29, 1  ;;  %v356_v40 = vshll.u32 %v4005_v30, 16  ;;  %v4014_v44 = vpack.c.bf16 %v234_v25, %v233_v24  ;;  %v239_v50 = vld [vmem:[%s3974_s16 + $0x78] sm:$0xff]  ;;  %v240_v51 = vld [vmem:[%s3974_s16 + $0x80] sm:$0xff]  ;;  %v242_v57 = vld [vmem:[%s3974_s16 + $0x90] sm:$0xff] }
  0x23   : > { %v330_v42 = vor.u32 %v329_v33, %v325_v20  ;;  %v353_v43 = vrot.slane %v351_v36, 1  ;;  %v4016_v45 = vpack.c.bf16 %v235_v31, %v235_v31  ;;  %v4018_v48 = vpack.c.bf16 %v237_v32, %v236_v26  ;;  %v241_v56 = vld [vmem:[%s3974_s16 + $0x88] sm:$0x3]  ;;  %v243_v58 = vld [vmem:[%s3974_s16 + $0x98] sm:$0xff]  ;;  %v244_v6 = vld [vmem:[%s3974_s16 + $0xa0] sm:$0x3] }
  0x24   : > { %v342_v46 = vor.u32 %v341_v38, %v337_v27  ;;  %v358_v47 = vrot.slane %v356_v40, 1  ;;  %v4020_v49 = vpack.c.bf16 %v238_v37, %v238_v37  ;;  %v361_v54 = vshrl.u32 %v4014_v44, 16  ;;  %v4052_v7 = vld [vmem:[%s5050_s1 + $0x4] sm:$0x3]  ;;  %v245_v17 = vld [vmem:[%s3974_s16 + $0xa8] sm:$0xff]  ;;  %v246_v18 = vld [vmem:[%s3974_s16 + $0xb0] sm:$0xff] }
  0x25   : > { %v335_v52 = vsel %vm323_vm1, %v330_v42, %v334_v34  ;;  %v354_v53 = vor.u32 %v353_v43, %v349_v35  ;;  %v363_v55 = vshll.u32 %v4014_v44, 16  ;;  %v368_v60 = vshll.u32 %v4016_v45, 16  ;;  %v247_v22 = vld [vmem:[%s3974_s16 + $0xb8] sm:$0x3]  ;;  %v248_v32 = vld [vmem:[%s3974_s16 + $0xc0] sm:$0xff]  ;;  %v249_v33 = vld [vmem:[%s3974_s16 + $0xc8] sm:$0xff] }
  0x26   : > { %3183 = vmatprep.mubr.msk.bf16.mxu1 %vm516_vm2, %v335_v52  ;;  %v347_v59 = vsel %vm323_vm1, %v342_v46, %v346_v39  ;;  %v373_v61 = vshrl.u32 %v4018_v48, 16  ;;  %v375_v62 = vshll.u32 %v4018_v48, 16  ;;  %v380_v4 = vshll.u32 %v4020_v49, 16  ;;  %v250_v46 = vld [vmem:[%s3974_s16 + $0xd0] sm:$0x3]  ;;  %v251_v52 = vld [vmem:[%s3974_s16 + $0xd8] sm:$0xff] }
  0x27   : > { %3319 = vmatprep.mubr.msk.bf16.mxu0 %vm516_vm2, %v347_v59  ;;  %3184 = vmatmul.mubr.msk.bf16.vlgmr.msra.gmra.mrb[0].mxu1 %vm516_vm2, %v347_v59  ;;  %v4043_v0 = vsel %vm323_vm1, %v354_v53, %v358_v47  ;;  %v365_v2 = vrot.slane %v363_v55, 1  ;;  %v4046_v5 = vpack.c.bf16 %v240_v51, %v239_v50  ;;  %v370_v8 = vrot.slane %v368_v60, 1  ;;  %v255_v59 = vld [vmem:[%s3974_s16 + $0xf8] sm:$0xff] }
  0x28   : > { %3216 = vmatpush3.bf16.msra.mxu1 %v763_v16  ;;  %3320 = vmatmul.mubr.msk.bf16.vlgmr.msra.gmra.mrb[0].mxu0 %vm516_vm2, %v4043_v0  ;;  %v377_v11 = vrot.slane %v375_v62, 1  ;;  %v4056_v12 = vpack.c.bf16 %v241_v56, %v241_v56  ;;  %v4058_v13 = vpack.c.bf16 %v243_v58, %v242_v57  ;;  %v382_v20 = vrot.slane %v380_v4, 1  ;;  %v252_v57 = vld [vmem:[%s3974_s16 + $0xe0] sm:$0xff]  ;;  %v254_v58 = vld [vmem:[%s3974_s16 + $0xf0] sm:$0xff]  ;;  %v253_v62 = vld [vmem:[%s3974_s16 + $0xe8] sm:$0x3] }
  0x29   : > { %3352 = vmatpush3.bf16.msra.mxu0 %v1669_v41  ;;  %3187 = vmatprep.mubr.msk.bf16.mxu1 %vm516_vm2, %v4043_v0  ;;  %v366_v19 = vor.u32 %v365_v2, %v361_v54  ;;  %v385_v16 = vshrl.u32 %v4046_v5, 16  ;;  %v387_v21 = vshll.u32 %v4046_v5, 16  ;;  %v4068_v26 = vpack.c.bf16 %v244_v6, %v244_v6 }
  0x2a   : > { %v378_v24 = vor.u32 %v377_v11, %v373_v61  ;;  %v392_v25 = vshll.u32 %v4056_v12, 16  ;;  %3752 = vmatprep.subr.msk.bf16.mxu0 %vm565_vm0, %v4038_v63  ;;  %3747 = vmatprep.subr.msk.bf16.mxu1 %vm565_vm0, %v4052_v7  ;;  %v399_v29 = vshll.u32 %v4058_v13, 16  ;;  %v4078_v31 = vpack.c.bf16 %v246_v18, %v245_v17  ;;  %v256_v18 = vld [vmem:[%s3974_s16 + $0x100] sm:$0x3] }
  0x2b   : > { %v4075_v27 = vsel %vm323_vm1, %v366_v19, %v370_v8  ;;  %v389_v28 = vrot.slane %v387_v21, 1  ;;  %v397_v36 = vshrl.u32 %v4058_v13, 16  ;;  %v4088_v37 = vpack.c.bf16 %v247_v22, %v247_v22 }
  0x2c   : > { %3323 = vmatprep.mubr.msk.bf16.mxu0 %vm516_vm2, %v4075_v27  ;;  %v4085_v34 = vsel %vm323_vm1, %v378_v24, %v382_v20  ;;  %v394_v35 = vrot.slane %v392_v25, 1  ;;  %v401_v39 = vrot.slane %v399_v29, 1  ;;  %v404_v40 = vshll.u32 %v4068_v26, 16  ;;  %v257_v24 = vld [vmem:[%s3974_s16 + $0x108] sm:$0xff]  ;;  %v258_v25 = vld [vmem:[%s3974_s16 + $0x110] sm:$0xff] }
  0x2d   : > { %v390_v38 = vor.u32 %v389_v28, %v385_v16  ;;  %v411_v41 = vshll.u32 %v4078_v31, 16  ;;  %v409_v42 = vshrl.u32 %v4078_v31, 16  ;;  %v416_v43 = vshll.u32 %v4088_v37, 16 }
  0x2e   : > { %v4095_v47 = vpack.c.bf16 %v249_v33, %v248_v32  ;;  %v402_v53 = vor.u32 %v401_v39, %v397_v36  ;;  %v406_v54 = vrot.slane %v404_v40, 1  ;;  %v4109_v55 = vpack.c.bf16 %v250_v46, %v250_v46  ;;  %v261_v36 = vld [vmem:[%s3974_s16 + $0x128] sm:$0xff] }
  0x2f   : > { %3188 = vmatmul.mubr.msk.bf16.gmra.mrb[4].mxu1 %vm516_vm2, %v4075_v27  ;;  %v4100_v50 = vsel %vm323_vm1, %v390_v38, %v394_v35  ;;  %v413_v51 = vrot.slane %v411_v41, 1  ;;  %v418_v61 = vrot.slane %v416_v43, 1  ;;  %v4116_v2 = vpack.c.bf16 %v252_v57, %v251_v52  ;;  %v260_v35 = vld [vmem:[%s3974_s16 + $0x120] sm:$0xff] }
  0x30   : > { %3324 = vmatmul.mubr.msk.bf16.gmra.mrb[4].mxu0 %vm516_vm2, %v4085_v34  ;;  %3191 = vmatprep.mubr.msk.bf16.mxu1 %vm516_vm2, %v4085_v34  ;;  %v423_v56 = vshll.u32 %v4095_v47, 16  ;;  %v4118_v4 = vpack.c.bf16 %v255_v59, %v254_v58  ;;  %v4121_v6 = vsel %vm323_vm1, %v402_v53, %v406_v54  ;;  %v421_v8 = vshrl.u32 %v4095_v47, 16  ;;  %v262_v54 = vld [vmem:[%s3974_s16 + $0x130] sm:$0x3] }
  0x31   : > { %3327 = vmatprep.mubr.msk.bf16.mxu0 %vm516_vm2, %v4100_v50  ;;  %v414_v60 = vor.u32 %v413_v51, %v409_v42  ;;  %v428_v17 = vshll.u32 %v4109_v55, 16  ;;  %v4131_v20 = vpack.c.bf16 %v253_v62, %v253_v62  ;;  %v435_v16 = vshll.u32 %v4116_v2, 16  ;;  %v259_v51 = vld [vmem:[%s3974_s16 + $0x118] sm:$0x3] }
  0x32   : > { %v425_v11 = vrot.slane %v423_v56, 1  ;;  %v4138_v21 = vpack.c.bf16 %v256_v18, %v256_v18  ;;  %v447_v22 = vshll.u32 %v4118_v4, 16  ;;  %v962_v32 = vrot.slane %v3986_v14, 1  ;;  %v264_v18 = vld [vmem:[%s3974_s16 + $0x140] sm:$0xff] }
  0x33   : > { %v4127_v19 = vsel %vm323_vm1, %v414_v60, %v418_v61  ;;  %v430_v29 = vrot.slane %v428_v17, 1  ;;  %v963_v33 = vrot.slane %v3988_v15, 1  ;;  %v433_v38 = vshrl.u32 %v4116_v2, 16  ;;  %v263_v17 = vld [vmem:[%s3974_s16 + $0x138] sm:$0xff] }
  0x34   : > { %v426_v28 = vor.u32 %v425_v11, %v421_v8  ;;  %v440_v39 = vshll.u32 %v4131_v20, 16  ;;  %v4151_v40 = vpack.c.bf16 %v258_v25, %v257_v24  ;;  %v437_v41 = vrot.slane %v435_v16, 1  ;;  %v266_v24 = vld [vmem:[%s3974_s16 + $0x150] sm:$0xff]  ;;  %v267_v25 = vld [vmem:[%s3974_s16 + $0x158] sm:$0xff] }
  0x35   : > { %v445_v42 = vshrl.u32 %v4118_v4, 16  ;;  %v449_v43 = vrot.slane %v447_v22, 1  ;;  %v452_v46 = vshll.u32 %v4138_v21, 16  ;;  %v4159_v15 = vpack.c.bf16 %v261_v36, %v260_v35 }
  0x36   : > { %v4157_v52 = vsel %vm323_vm1, %v426_v28, %v430_v29  ;;  %v4162_v53 = vsel %vm958_vm3, %v962_v32, %v963_v33  ;;  %v966_v56 = vrot.slane %v4005_v30, 1  ;;  %v965_v57 = vrot.slane %v3997_v23, 1 }
  0x37   : > { %3192 = vmatmul.mubr.msk.bf16.gmra.mrb[8].mxu1 %vm516_vm2, %v4100_v50  ;;  %v4169_v58 = vpack.c.bf16 %v259_v51, %v259_v51  ;;  %v459_v59 = vshll.u32 %v4151_v40, 16  ;;  %v438_v60 = vor.u32 %v437_v41, %v433_v38  ;;  %v442_v61 = vrot.slane %v440_v39, 1 }
  0x38   : > { %3328 = vmatmul.mubr.msk.bf16.gmra.mrb[8].mxu0 %vm516_vm2, %v4121_v6  ;;  %3195 = vmatprep.mubr.msk.bf16.mxu1 %vm516_vm2, %v4121_v6  ;;  %v450_v30 = vor.u32 %v449_v43, %v445_v42  ;;  %v454_v62 = vrot.slane %v452_v46, 1  ;;  %v4178_v8 = vpack.c.bf16 %v262_v54, %v262_v54  ;;  %v471_v11 = vshll.u32 %v4159_v15, 16  ;;  %v265_v42 = vld [vmem:[%s3974_s16 + $0x148] sm:$0x3]  ;;  %v268_v54 = vld [vmem:[%s3974_s16 + $0x160] sm:$0x3] }
  0x39   : > { %3331 = vmatprep.mubr.msk.bf16.mxu0 %vm516_vm2, %v4127_v19  ;;  %v968_v16 = vrot.slane %v4014_v44, 1  ;;  %v969_v22 = vrot.slane %v4016_v45, 1  ;;  %v457_v28 = vshrl.u32 %v4151_v40, 16  ;;  %v461_v29 = vrot.slane %v459_v59, 1 }
  0x3a   : > { %v464_v32 = vshll.u32 %v4169_v58, 16  ;;  %v4190_v33 = vsel %vm323_vm1, %v438_v60, %v442_v61  ;;  %v4193_v35 = vsel %vm958_vm3, %v965_v57, %v966_v56  ;;  %v4196_v36 = vsel %vm323_vm1, %v450_v30, %v454_v62  ;;  %v4218_v61 = vld [vmem:[%s5050_s1 + $0xe] sm:$0x3] }
  0x3b   : > { %v4198_v38 = vpack.c.bf16 %v264_v18, %v263_v17  ;;  %v469_v45 = vshrl.u32 %v4159_v15, 16  ;;  %v473_v39 = vrot.slane %v471_v11, 1  ;;  %v476_v41 = vshll.u32 %v4178_v8, 16  ;;  %v269_v18 = vld [vmem:[%s3974_s16 + $0x168] sm:$0xff] }
  0x3c   : > { %v4203_v43 = vpack.c.bf16 %v267_v25, %v266_v24  ;;  %v1868_v46 = vsel %vm565_vm0, %v4038_v63, 0  ;;  %v4208_v51 = vsel %vm958_vm3, %v968_v16, %v969_v22  ;;  %v462_v56 = vor.u32 %v461_v29, %v457_v28  ;;  %v270_v16 = vld [vmem:[%s3974_s16 + $0x170] sm:$0xff] }
  0x3d   : > { %v466_v57 = vrot.slane %v464_v32, 1  ;;  %v971_v59 = vrot.slane %v4018_v48, 1  ;;  %v972_v60 = vrot.slane %v4020_v49, 1  ;;  %v4224_v63 = vpack.c.bf16 %v265_v42, %v265_v42 }
  0x3e   : > { %v483_v30 = vshll.u32 %v4198_v38, 16  ;;  %v474_v49 = vor.u32 %v473_v39, %v469_v45  ;;  %v478_v62 = vrot.slane %v476_v41, 1  ;;  %v4229_v11 = vpack.c.bf16 %v268_v54, %v268_v54  ;;  %v271_v54 = vld [vmem:[%s3974_s16 + $0x178] sm:$0x3] }
  0x3f   : > { %3196 = vmatmul.mubr.msk.bf16.gmra.mrb[12].mxu1 %vm516_vm2, %v4127_v19  ;;  %v495_v17 = vshll.u32 %v4203_v43, 16  ;;  %v974_v22 = vrot.slane %v4046_v5, 1  ;;  %v975_v24 = vrot.slane %v4056_v12, 1  ;;  %v4239_v25 = vsel %vm323_vm1, %v462_v56, %v466_v57 }
  0x40   : > { %3332 = vmatmul.mubr.msk.bf16.gmra.mrb[12].mxu0 %vm516_vm2, %v4157_v52  ;;  %3199 = vmatprep.mubr.msk.bf16.mxu1 %vm516_vm2, %v4157_v52  ;;  %v4242_v28 = vsel %vm958_vm3, %v971_v59, %v972_v60  ;;  %v481_v29 = vshrl.u32 %v4198_v38, 16  ;;  %v485_v32 = vrot.slane %v483_v30, 1  ;;  %v488_v45 = vshll.u32 %v4224_v63, 16 }
  0x41   : > { %3353 = vmatprep.mubr.msk.bf16.mxu0 %vm516_vm2, %v4162_v53  ;;  %v4246_v39 = vpack.c.bf16 %v270_v16, %v269_v18  ;;  %v4249_v41 = vsel %vm323_vm1, %v474_v49, %v478_v62  ;;  %v493_v12 = vshrl.u32 %v4203_v43, 16  ;;  %v497_v42 = vrot.slane %v495_v17, 1 }
  0x42   : > { %5059 = vst [vmem:[#allocation5_spill] sm:$0xff] %v4249_v41  ;;  %v4255_v56 = vsel %vm958_vm3, %v974_v22, %v975_v24  ;;  %v486_v57 = vor.u32 %v485_v32, %v481_v29  ;;  %v490_v59 = vrot.slane %v488_v45, 1  ;;  %v4263_v60 = vpack.c.bf16 %v271_v54, %v271_v54 }
  0x43   : > { %v507_v30 = vshll.u32 %v4246_v39, 16  ;;  %v977_v49 = vrot.slane %v4058_v13, 1  ;;  %v978_v62 = vrot.slane %v4068_v26, 1  ;;  %v498_v17 = vor.u32 %v497_v42, %v493_v12 }
  0x44   : > { %v980_v16 = vrot.slane %v4078_v31, 1  ;;  %v981_v22 = vrot.slane %v4088_v37, 1  ;;  %v4273_v24 = vsel %vm323_vm1, %v486_v57, %v490_v59  ;;  %v505_v29 = vshrl.u32 %v4246_v39, 16 }
  0x45   : > { %v509_v32 = vrot.slane %v507_v30, 1  ;;  %v512_v45 = vshll.u32 %v4263_v60, 16  ;;  %v4278_v54 = vsel %vm958_vm3, %v977_v49, %v978_v62  ;;  %v983_v42 = vrot.slane %v4095_v47, 1 }
  0x46   : > { %v4284_v26 = vsel %vm958_vm3, %v980_v16, %v981_v22  ;;  %v986_v57 = vrot.slane %v4116_v2, 1  ;;  %v987_v59 = vrot.slane %v4131_v20, 1  ;;  %v990_v20 = vrot.slane %v4138_v21, 1  ;;  %v317_v21 = vld [vmem:[%s5050_s1 + $0x6] sm:$0x3] }
  0x47   : > { %3200 = vmatmul.mubr.msk.bf16.gmra.mrb[16].mxu1 %vm516_vm2, %v4190_v33  ;;  %v510_v37 = vor.u32 %v509_v32, %v505_v29  ;;  %v514_v12 = vrot.slane %v512_v45, 1  ;;  %v1056_v16 = vsel %vm565_vm0, %v4052_v7, 0  ;;  %v995_v7 = vrot.slane %v4159_v15, 1 }
  0x48   : > { %3354 = vmatmul.mubr.msk.bf16.vlgmr.msra.gmra.mrb[0].mxu0 %vm516_vm2, %v4193_v35  ;;  %3203 = vmatprep.mubr.msk.bf16.mxu1 %vm516_vm2, %v4196_v36  ;;  %v4305_v62 = vsel %vm958_vm3, %v986_v57, %v987_v59  ;;  %v998_v32 = vrot.slane %v4198_v38, 1  ;;  %v999_v45 = vrot.slane %v4224_v63, 1  ;;  %v1002_v63 = vrot.slane %v4229_v11, 1  ;;  %v272_v57 = vld [vmem:[%s3974_s16 + $0x180] sm:$0xff]  ;;  %v273_v59 = vld [vmem:[%s3974_s16 + $0x188] sm:$0xff] }
  0x49   : > { %3386 = vmatpush3.bf16.msra.mxu0 %v1868_v46  ;;  %3357 = vmatprep.mubr.msk.bf16.mxu0 %vm516_vm2, %v4208_v51  ;;  %v500_v46 = vshll.u32 %v4229_v11, 16  ;;  %v4299_v30 = vsel %vm323_vm1, %v510_v37, %v514_v12 }
  0x4a   : > { %3753 = vmatprep.subr.msk.bf16.mxu0 %vm565_vm0, %v4218_v61  ;;  %v4347_v12 = vsel %vm958_vm3, %v998_v32, %v999_v45  ;;  %v322_v32 = vld [vmem:[%s5050_s1 + $0x10] sm:$0x3]  ;;  %v960_v45 = vrot.slane %v3981_v10, 1 }
  0x4b   : > { %v502_v18 = vrot.slane %v500_v46, 1  ;;  %v984_v46 = vrot.slane %v4109_v55, 1  ;;  %v989_v55 = vrot.slane %v4118_v4, 1 }
  0x4d   : > { %v4302_v49 = vsel %vm958_vm3, %v983_v42, %v984_v46  ;;  %v4322_v22 = vsel %vm958_vm3, %v989_v55, %v990_v20  ;;  %v1004_v42 = vrot.slane %v4246_v39, 1  ;;  %v1005_v46 = vrot.slane %v4263_v60, 1  ;;  %v274_v55 = vld [vmem:[%s3974_s16 + $0x190] sm:$0x3] }
  0x4f   : > { %3204 = vmatmul.mubr.msk.bf16.gmra.mrb[20].mxu1 %vm516_vm2, %v4239_v25 }
  0x50   : > { %3358 = vmatmul.mubr.msk.bf16.gmra.mrb[4].mxu0 %vm516_vm2, %v4242_v28  ;;  %3207 = vmatprep.mubr.msk.bf16.mxu1 %vm516_vm2, %v4249_v41  ;;  %v4281_v41 = vsel %vm323_vm1, %v498_v17, %v502_v18  ;;  %v992_v17 = vrot.slane %v4151_v40, 1  ;;  %v993_v18 = vrot.slane %v4169_v58, 1  ;;  %v996_v58 = vrot.slane %v4178_v8, 1 }
  0x51   : > { %3361 = vmatprep.mubr.msk.bf16.mxu0 %vm516_vm2, %v4255_v56  ;;  %v1001_v8 = vrot.slane %v4203_v43, 1 }
  0x52   : > { %v4325_v29 = vsel %vm958_vm3, %v992_v17, %v993_v18  ;;  %v4344_v37 = vsel %vm958_vm3, %v995_v7, %v996_v58  ;;  %v4367_v17 = vpack.c.bf16 %v273_v59, %v272_v57  ;;  %v4369_v18 = vpack.c.bf16 %v274_v55, %v274_v55 }
  0x53   : > { %v4365_v20 = vsel %vm958_vm3, %v1001_v8, %v1002_v63  ;;  %v2078_v58 = vsel %vm565_vm0, %v4218_v61, 0  ;;  %v959_v61 = vrot.slane %v3979_v9, 1  ;;  %v1255_v63 = vsel %vm565_vm0, %v317_v21, 0 }
  0x54   : > { %v1662_v11 = vrot.slane %v4367_v17, 1  ;;  %v1663_v60 = vrot.slane %v4369_v18, 1 }
  0x55   : > { %v961_v8 = vsel %vm958_vm3, %v959_v61, %v960_v45 }
  0x56   : > { %v4385_v7 = vsel %vm958_vm3, %v1662_v11, %v1663_v60 }
  0x57   : > { %3208 = vmatmul.mubr.msk.bf16.gmra.mrb[24].mxu1 %vm516_vm2, %v4273_v24 }
  0x58   : > { %3362 = vmatmul.mubr.msk.bf16.gmra.mrb[8].mxu0 %vm516_vm2, %v4278_v54  ;;  %3211 = vmatprep.mubr.msk.bf16.mxu1 %vm516_vm2, %v4281_v41 }
  0x59   : > { %3365 = vmatprep.mubr.msk.bf16.mxu0 %vm516_vm2, %v4284_v26 }
  0x5f   : > { %3212 = vmatmul.mubr.msk.bf16.gmra.mrb[28].mxu1 %vm516_vm2, %v4299_v30 }
  0x60   : > { %3366 = vmatmul.mubr.msk.bf16.gmra.mrb[12].mxu0 %vm516_vm2, %v4302_v49  ;;  %3217 = vmatprep.mubr.msk.bf16.mxu1 %vm516_vm2, %v3979_v9  ;;  %v276_v9 = vld [vmem:[%s3974_s16 + $0x1a0] sm:$0xff] }
  0x61   : > { %3369 = vmatprep.mubr.msk.bf16.mxu0 %vm516_vm2, %v4305_v62 }
  0x67   : > { %3218 = vmatmul.mubr.msk.bf16.vlgmr.msra.gmra.mrb[0].mxu1 %vm516_vm2, %v3986_v14 }
  0x68   : > { %3250 = vmatpush3.bf16.msra.mxu1 %v1056_v16  ;;  %3370 = vmatmul.mubr.msk.bf16.gmra.mrb[16].mxu0 %vm516_vm2, %v4322_v22  ;;  %v4372_v16 = vsel %vm958_vm3, %v1004_v42, %v1005_v46 }
  0x69   : > { %3221 = vmatprep.mubr.msk.bf16.mxu1 %vm516_vm2, %v3997_v23  ;;  %3373 = vmatprep.mubr.msk.bf16.mxu0 %vm516_vm2, %v4325_v29 }
  0x6a   : > { %3748 = vmatprep.subr.msk.bf16.mxu1 %vm565_vm0, %v317_v21 }
  0x6f   : > { %3222 = vmatmul.mubr.msk.bf16.gmra.mrb[4].mxu1 %vm516_vm2, %v4014_v44 }
  0x70   : > { %3374 = vmatmul.mubr.msk.bf16.gmra.mrb[20].mxu0 %vm516_vm2, %v4344_v37  ;;  %3225 = vmatprep.mubr.msk.bf16.mxu1 %vm516_vm2, %v4018_v48 }
  0x71   : > { %3377 = vmatprep.mubr.msk.bf16.mxu0 %vm516_vm2, %v4347_v12 }
  0x77   : > { %3226 = vmatmul.mubr.msk.bf16.gmra.mrb[8].mxu1 %vm516_vm2, %v4046_v5 }
  0x78   : > { %3378 = vmatmul.mubr.msk.bf16.gmra.mrb[24].mxu0 %vm516_vm2, %v4365_v20  ;;  %3229 = vmatprep.mubr.msk.bf16.mxu1 %vm516_vm2, %v4058_v13 }
  0x79   : > { %3381 = vmatprep.mubr.msk.bf16.mxu0 %vm516_vm2, %v4372_v16 }
  0x7f   : > { %3230 = vmatmul.mubr.msk.bf16.gmra.mrb[12].mxu1 %vm516_vm2, %v4078_v31 }
  0x80   : > { %3382 = vmatmul.mubr.msk.bf16.gmra.mrb[28].mxu0 %vm516_vm2, %v4385_v7  ;;  %3233 = vmatprep.mubr.msk.bf16.mxu1 %vm516_vm2, %v4095_v47 }
  0x81   : > { %3387 = vmatprep.mubr.msk.bf16.mxu0 %vm516_vm2, %v3997_v23 }
  0x87   : > { %3234 = vmatmul.mubr.msk.bf16.gmra.mrb[16].mxu1 %vm516_vm2, %v4116_v2 }
  0x88   : > { %3388 = vmatmul.mubr.msk.bf16.vlgmr.msra.gmra.mrb[0].mxu0 %vm516_vm2, %v4014_v44  ;;  %3237 = vmatprep.mubr.msk.bf16.mxu1 %vm516_vm2, %v4118_v4 }
  0x89   : > { %3420 = vmatpush3.bf16.msra.mxu0 %v2078_v58  ;;  %3391 = vmatprep.mubr.msk.bf16.mxu0 %vm516_vm2, %v4018_v48 }
  0x8a   : > { %3754 = vmatprep.subr.msk.bf16.mxu0 %vm565_vm0, %v322_v32 }
  0x8f   : > { %3238 = vmatmul.mubr.msk.bf16.gmra.mrb[20].mxu1 %vm516_vm2, %v4151_v40 }
  0x90   : > { %3392 = vmatmul.mubr.msk.bf16.gmra.mrb[4].mxu0 %vm516_vm2, %v4046_v5  ;;  %3241 = vmatprep.mubr.msk.bf16.mxu1 %vm516_vm2, %v4159_v15 }
  0x91   : > { %3395 = vmatprep.mubr.msk.bf16.mxu0 %vm516_vm2, %v4058_v13 }
  0x97   : > { %3242 = vmatmul.mubr.msk.bf16.gmra.mrb[24].mxu1 %vm516_vm2, %v4198_v38 }
  0x98   : > { %3396 = vmatmul.mubr.msk.bf16.gmra.mrb[8].mxu0 %vm516_vm2, %v4078_v31  ;;  %3245 = vmatprep.mubr.msk.bf16.mxu1 %vm516_vm2, %v4203_v43 }
  0x99   : > { %3399 = vmatprep.mubr.msk.bf16.mxu0 %vm516_vm2, %v4095_v47 }
  0x9f   : > { %3246 = vmatmul.mubr.msk.bf16.gmra.mrb[28].mxu1 %vm516_vm2, %v4246_v39 }
  0xa0   : > { %3400 = vmatmul.mubr.msk.bf16.gmra.mrb[12].mxu0 %vm516_vm2, %v4116_v2  ;;  %3251 = vmatprep.mubr.msk.bf16.mxu1 %vm516_vm2, %v961_v8 }
  0xa1   : > { %3403 = vmatprep.mubr.msk.bf16.mxu0 %vm516_vm2, %v4118_v4 }
  0xa7   : > { %3252 = vmatmul.mubr.msk.bf16.vlgmr.msra.gmra.mrb[0].mxu1 %vm516_vm2, %v4162_v53  ;;  %v2282_v53 = vsel %vm565_vm0, %v322_v32, 0 }
  0xa8   : > { %3284 = vmatpush3.bf16.msra.mxu1 %v1255_v63  ;;  %3404 = vmatmul.mubr.msk.bf16.gmra.mrb[16].mxu0 %vm516_vm2, %v4151_v40 }
  0xa9   : > { %3255 = vmatprep.mubr.msk.bf16.mxu1 %vm516_vm2, %v4193_v35  ;;  %3407 = vmatprep.mubr.msk.bf16.mxu0 %vm516_vm2, %v4159_v15 }
  0xaa   : > { %3750 = vmatprep.subr.msk.bf16.mxu1 %vm565_vm0, %v3950_v1  ;;  %v275_v1 = vld [vmem:[%s3974_s16 + $0x198] sm:$0xff] }
  0xab   : > { %v4464_v10 = vpack.c.bf16 %v276_v9, %v275_v1 }
  0xaf   : > { %3256 = vmatmul.mubr.msk.bf16.gmra.mrb[4].mxu1 %vm516_vm2, %v4208_v51 }
  0xb0   : > { %3408 = vmatmul.mubr.msk.bf16.gmra.mrb[20].mxu0 %vm516_vm2, %v4198_v38  ;;  %3259 = vmatprep.mubr.msk.bf16.mxu1 %vm516_vm2, %v4242_v28 }
  0xb1   : > { %3411 = vmatprep.mubr.msk.bf16.mxu0 %vm516_vm2, %v4203_v43 }
  0xb7   : > { %3260 = vmatmul.mubr.msk.bf16.gmra.mrb[8].mxu1 %vm516_vm2, %v4255_v56 }
  0xb8   : > { %3412 = vmatmul.mubr.msk.bf16.gmra.mrb[24].mxu0 %vm516_vm2, %v4246_v39  ;;  %3263 = vmatprep.mubr.msk.bf16.mxu1 %vm516_vm2, %v4278_v54 }
  0xb9   : > { %3415 = vmatprep.mubr.msk.bf16.mxu0 %vm516_vm2, %v4367_v17 }
  0xbf   : > { %3264 = vmatmul.mubr.msk.bf16.gmra.mrb[12].mxu1 %vm516_vm2, %v4284_v26 }
  0xc0   : > { %3416 = vmatmul.mubr.msk.bf16.gmra.mrb[28].mxu0 %vm516_vm2, %v4464_v10  ;;  %3267 = vmatprep.mubr.msk.bf16.mxu1 %vm516_vm2, %v4302_v49 }
  0xc1   : > { %3421 = vmatprep.mubr.msk.bf16.mxu0 %vm516_vm2, %v4043_v0  ;;  %v5060_v0 = vld [vmem:[#allocation5_spill] sm:$0xff] }
  0xc7   : > { %3268 = vmatmul.mubr.msk.bf16.gmra.mrb[16].mxu1 %vm516_vm2, %v4305_v62 }
  0xc8   : > { %3422 = vmatmul.mubr.msk.bf16.vlgmr.msra.gmra.mrb[0].mxu0 %vm516_vm2, %v4075_v27  ;;  %3271 = vmatprep.mubr.msk.bf16.mxu1 %vm516_vm2, %v4322_v22  ;;  %v1452_v27 = vshll.u32 %v4367_v17, 16 }
  0xc9   : > { %3454 = vmatpush3.bf16.msra.mxu0 %v2282_v53  ;;  %3425 = vmatprep.mubr.msk.bf16.mxu0 %vm516_vm2, %v4085_v34 }
  0xca   : > { %v1454_v34 = vrot.slane %v1452_v27, 1 }
  0xcf   : > { %3272 = vmatmul.mubr.msk.bf16.gmra.mrb[20].mxu1 %vm516_vm2, %v4325_v29 }
  0xd0   : > { %3426 = vmatmul.mubr.msk.bf16.gmra.mrb[4].mxu0 %vm516_vm2, %v4100_v50  ;;  %3275 = vmatprep.mubr.msk.bf16.mxu1 %vm516_vm2, %v4344_v37  ;;  %v1457_v50 = vshll.u32 %v4369_v18, 16 }
  0xd1   : > { %3429 = vmatprep.mubr.msk.bf16.mxu0 %vm516_vm2, %v4121_v6  ;;  %v277_v6 = vld [vmem:[%s3974_s16 + $0x1a8] sm:$0x3]  ;;  %s4862_s16 = scalar_lea.vmem [#allocation2], %s2874_s15 }
  0xd2   : > { %s2808_s22 = sshll.u32 %s4862_s16, 4  ;;  %s4988_s22 = int_to_ptr.vmem [resolvable:$true] %s2808_s22 }
  0xd3   : > { %s3799_s30 = scalar_lea.vmem %s4988_s22, 4096  ;;  %p3806_p0 = scmp.lt.s32.totalorder %s4988_s22, %s3804_s7 }
  0xd4   : > { %p3800_p11 = scmp.ne.s32.totalorder %s4988_s22, %s3799_s30  ;;  %p3807_p1 = scmp.lt.s32.totalorder %s3805_s8, %s3799_s30 }
  0xd6   : > { %p3801_p12 = pnand %p3800_p11, %p3934_p5  ;;  %p3808_p2 = por %p3807_p1, %p3806_p0 }
  0xd7   : > { %3276 = vmatmul.mubr.msk.bf16.gmra.mrb[24].mxu1 %vm516_vm2, %v4347_v12 }
  0xd8   : > { %3430 = vmatmul.mubr.msk.bf16.gmra.mrb[8].mxu0 %vm516_vm2, %v4127_v19  ;;  %3279 = vmatprep.mubr.msk.bf16.mxu1 %vm516_vm2, %v4365_v20  ;;  %v1459_v19 = vrot.slane %v1457_v50, 1  ;;  %p3802_p13 = pneg %p3801_p12 }
  0xd9   : > { %3433 = vmatprep.mubr.msk.bf16.mxu0 %vm516_vm2, %v4157_v52  ;;  %v2063_v52 = vshrl.u32 %v4464_v10, 16 }
  0xda   : > { %p3809_p3 = pnand %p3808_p2, %p3802_p13 }
  0xdf   : > { %3280 = vmatmul.mubr.msk.bf16.gmra.mrb[28].mxu1 %vm516_vm2, %v4372_v16 }
  0xe0   : > { %3434 = vmatmul.mubr.msk.bf16.gmra.mrb[12].mxu0 %vm516_vm2, %v4190_v33  ;;  %3285 = vmatprep.mubr.msk.bf16.mxu1 %vm516_vm2, %v3986_v14  ;;  %v1450_v14 = vshrl.u32 %v4367_v17, 16 }
  0xe1   : > { %3437 = vmatprep.mubr.msk.bf16.mxu0 %vm516_vm2, %v4196_v36 }
  0xe7   : > { %3286 = vmatmul.mubr.msk.bf16.vlgmr.msra.gmra.mrb[0].mxu1 %vm516_vm2, %v3997_v23  ;;  %v2065_v23 = vshll.u32 %v4464_v10, 16 }
  0xe8   : > { %3488 = vmatpush3.bf16.msra.mxu1 %v3959_v3  ;;  %3438 = vmatmul.mubr.msk.bf16.gmra.mrb[16].mxu0 %vm516_vm2, %v4239_v25  ;;  %v313_v3 = vpack.c.bf16 %v277_v6, %v277_v6 }
  0xe9   : > { %3289 = vmatprep.mubr.msk.bf16.mxu1 %vm516_vm2, %v4014_v44  ;;  %3441 = vmatprep.mubr.msk.bf16.mxu0 %vm516_vm2, %v5060_v0  ;;  %v1455_v44 = vor.u32 %v1454_v34, %v1450_v14  ;;  %v2067_v21 = vrot.slane %v2065_v23, 1 }
  0xea   : > { %v2070_v42 = vshll.u32 %v313_v3, 16 }
  0xec   : > { %v2072_v46 = vrot.slane %v2070_v42, 1 }
  0xef   : > { %3290 = vmatmul.mubr.msk.bf16.gmra.mrb[4].mxu1 %vm516_vm2, %v4018_v48  ;;  %v1460_v48 = vsel %vm323_vm1, %v1455_v44, %v1459_v19 }
  0xf0   : > { %3442 = vmatmul.mubr.msk.bf16.gmra.mrb[20].mxu0 %vm516_vm2, %v4273_v24  ;;  %3293 = vmatprep.mubr.msk.bf16.mxu1 %vm516_vm2, %v4046_v5  ;;  %v2068_v5 = vor.u32 %v2067_v21, %v2063_v52 }
  0xf1   : > { %3445 = vmatprep.mubr.msk.bf16.mxu0 %vm516_vm2, %v4281_v41 }
  0xf2   : > { %v2073_v57 = vsel %vm323_vm1, %v2068_v5, %v2072_v46 }
  0xf7   : > { %3294 = vmatmul.mubr.msk.bf16.gmra.mrb[8].mxu1 %vm516_vm2, %v4058_v13  ;;  %v2275_v13 = vrot.slane %v4464_v10, 1 }
  0xf8   : > { %3446 = vmatmul.mubr.msk.bf16.gmra.mrb[24].mxu0 %vm516_vm2, %v4299_v30  ;;  %3297 = vmatprep.mubr.msk.bf16.mxu1 %vm516_vm2, %v4078_v31  ;;  %v2276_v31 = vrot.slane %v313_v3, 1 }
  0xf9   : > { %3449 = vmatprep.mubr.msk.bf16.mxu0 %vm516_vm2, %v1460_v48 }
  0xff   : > { %3298 = vmatmul.mubr.msk.bf16.gmra.mrb[12].mxu1 %vm516_vm2, %v4095_v47  ;;  %v2277_v47 = vsel %vm958_vm3, %v2275_v13, %v2276_v31 }
 0x100   : > { %3450 = vmatmul.mubr.msk.bf16.gmra.mrb[28].mxu0 %vm516_vm2, %v2073_v57  ;;  %3301 = vmatprep.mubr.msk.bf16.mxu1 %vm516_vm2, %v4116_v2 }
 0x101   : > { %3455 = vmatprep.mubr.msk.bf16.mxu0 %vm516_vm2, %v4193_v35 }
 0x107   : > { %3302 = vmatmul.mubr.msk.bf16.gmra.mrb[16].mxu1 %vm516_vm2, %v4118_v4 }
 0x108   : > { %3456 = vmatmul.mubr.msk.bf16.vlgmr.msra.gmra.mrb[0].mxu0 %vm516_vm2, %v4208_v51  ;;  %3305 = vmatprep.mubr.msk.bf16.mxu1 %vm516_vm2, %v4151_v40 }
 0x109   : > { %3459 = vmatprep.mubr.msk.bf16.mxu0 %vm516_vm2, %v4242_v28 }
 0x10f   : > { %3306 = vmatmul.mubr.msk.bf16.gmra.mrb[20].mxu1 %vm516_vm2, %v4159_v15 }
 0x110   : > { %3460 = vmatmul.mubr.msk.bf16.gmra.mrb[4].mxu0 %vm516_vm2, %v4255_v56  ;;  %3309 = vmatprep.mubr.msk.bf16.mxu1 %vm516_vm2, %v4198_v38 }
 0x111   : > { %3463 = vmatprep.mubr.msk.bf16.mxu0 %vm516_vm2, %v4278_v54 }
 0x117   : > { %3310 = vmatmul.mubr.msk.bf16.gmra.mrb[24].mxu1 %vm516_vm2, %v4203_v43 }
 0x118   : > { %3464 = vmatmul.mubr.msk.bf16.gmra.mrb[8].mxu0 %vm516_vm2, %v4284_v26  ;;  %3313 = vmatprep.mubr.msk.bf16.mxu1 %vm516_vm2, %v4246_v39 }
 0x119   : > { %3467 = vmatprep.mubr.msk.bf16.mxu0 %vm516_vm2, %v4302_v49 }
 0x11f   : > { %3314 = vmatmul.mubr.msk.bf16.gmra.mrb[28].mxu1 %vm516_vm2, %v4367_v17 }
 0x120   : > { %3468 = vmatmul.mubr.msk.bf16.gmra.mrb[12].mxu0 %vm516_vm2, %v4305_v62  ;;  %3335 = vmatprep.mubr.msk.bf16.mxu1 %vm516_vm2, %v4190_v33 }
 0x121   : > { %3471 = vmatprep.mubr.msk.bf16.mxu0 %vm516_vm2, %v4322_v22 }
 0x127   : > { %3336 = vmatmul.mubr.msk.bf16.vlgmr.msra.gmra.mrb[16].mxu1 %vm516_vm2, %v4196_v36 }
 0x128   : > { %3472 = vmatmul.mubr.msk.bf16.gmra.mrb[16].mxu0 %vm516_vm2, %v4325_v29  ;;  %3339 = vmatprep.mubr.msk.bf16.mxu1 %vm516_vm2, %v4239_v25 }
 0x129   : > { %3475 = vmatprep.mubr.msk.bf16.mxu0 %vm516_vm2, %v4344_v37 }
 0x12f   : > { %3340 = vmatmul.mubr.msk.bf16.gmra.mrb[20].mxu1 %vm516_vm2, %v5060_v0 }
 0x130   : > { %3476 = vmatmul.mubr.msk.bf16.gmra.mrb[20].mxu0 %vm516_vm2, %v4347_v12  ;;  %3343 = vmatprep.mubr.msk.bf16.mxu1 %vm516_vm2, %v4273_v24 }
 0x131   : > { %3479 = vmatprep.mubr.msk.bf16.mxu0 %vm516_vm2, %v4365_v20 }
 0x137   : > { %3344 = vmatmul.mubr.msk.bf16.gmra.mrb[24].mxu1 %vm516_vm2, %v4281_v41 }
 0x138   : > { %3480 = vmatmul.mubr.msk.bf16.gmra.mrb[24].mxu0 %vm516_vm2, %v4372_v16  ;;  %3347 = vmatprep.mubr.msk.bf16.mxu1 %vm516_vm2, %v4299_v30 }
 0x139   : > { %3483 = vmatprep.mubr.msk.bf16.mxu0 %vm516_vm2, %v4385_v7 }
 0x13f   : > { %3348 = vmatmul.mubr.msk.bf16.gmra.mrb[28].mxu1 %vm516_vm2, %v1460_v48 }
 0x140   : > { %3484 = vmatmul.mubr.msk.bf16.gmra.mrb[28].mxu0 %vm516_vm2, %v2277_v47 }
 0x1ba   : > { %v3287_v2 = vpop.f32.mrb[0].mxu1 }
 0x1bb   : > { %v1291_v4 = vpop.f32.mrb[1].mxu1 }
 0x1bc   : > { %v3288_v40 = vpop.f32.mrb[2].mxu1 }
 0x1bd   : > { %v1294_v15 = vpop.f32.mrb[3].mxu1 }
 0x1c2   : > { %v3291_v33 = vpop.f32.mrb[4].mxu1 }
 0x1c3   : > { %v1307_v35 = vpop.f32.mrb[5].mxu1 }
 0x1c4   : > { %v3292_v36 = vpop.f32.mrb[6].mxu1 }
 0x1c5   : > { %v1310_v38 = vpop.f32.mrb[7].mxu1 }
 0x1ca   : > { %v3295_v43 = vpop.f32.mrb[8].mxu1 }
 0x1cb   : > { %v1323_v51 = vpop.f32.mrb[9].mxu1 }
 0x1cc   : > { %v3296_v25 = vpop.f32.mrb[10].mxu1 }
 0x1cd   : > { %v1326_v28 = vpop.f32.mrb[11].mxu1 }
 0x1d2   : > { %v3299_v39 = vpop.f32.mrb[12].mxu1 }
 0x1d3   : > { %v1339_v41 = vpop.f32.mrb[13].mxu1 }
 0x1d4   : > { %v3300_v56 = vpop.f32.mrb[14].mxu1 }
 0x1d5   : > { %v1342_v24 = vpop.f32.mrb[15].mxu1 }
 0x1db   : > { %v3457_v54 = vpop.f32.mrb[0].mxu0 }
 0x1dc   : > { %v4606_v26 = vadd.f32 %v3457_v54, %v3287_v2  ;;  %v2318_v30 = vpop.f32.mrb[1].mxu0 }
 0x1dd   : > { %v4608_v49 = vadd.f32 %v2318_v30, %v1291_v4  ;;  %v3458_v62 = vpop.f32.mrb[2].mxu0 }
 0x1de   : > { %v4610_v22 = vadd.f32 %v3458_v62, %v3288_v40  ;;  %v2321_v29 = vpop.f32.mrb[3].mxu0 }
 0x1df   : > { %v4612_v37 = vadd.f32 %v2321_v29, %v1294_v15 }
 0x1e1   : > { %v2479_v12 = vadd.f32 %v4612_v37, %v4608_v49 }
 0x1e3   : > { %v2480_v59 = vadd.f32 %v4606_v26, %v2479_v12  ;;  %v3461_v55 = vpop.f32.mrb[4].mxu0 }
 0x1e4   : > { %v4617_v20 = vadd.f32 %v3461_v55, %v3291_v33  ;;  %v2334_v17 = vpop.f32.mrb[5].mxu0 }
 0x1e5   : > { %v4619_v18 = vadd.f32 %v2334_v17, %v1307_v35  ;;  %v2481_v16 = vadd.f32 %v4610_v22, %v2480_v59  ;;  %v3462_v11 = vpop.f32.mrb[6].mxu0 }
 0x1e6   : > { %v4622_v60 = vadd.f32 %v3462_v11, %v3292_v36  ;;  %v2337_v7 = vpop.f32.mrb[7].mxu0 }
 0x1e7   : > { %v2482_v58 = vadd.f32 %v4619_v18, %v2481_v16  ;;  %v4625_v32 = vadd.f32 %v2337_v7, %v1310_v38 }
 0x1e9   : > { %v2483_v61 = vadd.f32 %v4625_v32, %v2482_v58 }
 0x1eb   : > { %v2484_v45 = vadd.f32 %v4617_v20, %v2483_v61  ;;  %v3465_v8 = vpop.f32.mrb[8].mxu0 }
 0x1ec   : > { %v4629_v63 = vadd.f32 %v3465_v8, %v3295_v43  ;;  %v2350_v1 = vpop.f32.mrb[9].mxu0 }
 0x1ed   : > { %v4631_v9 = vadd.f32 %v2350_v1, %v1323_v51  ;;  %v2485_v10 = vadd.f32 %v4622_v60, %v2484_v45  ;;  %v3466_v53 = vpop.f32.mrb[10].mxu0 }
 0x1ee   : > { %v4634_v0 = vadd.f32 %v3466_v53, %v3296_v25  ;;  %v2353_v27 = vpop.f32.mrb[11].mxu0 }
 0x1ef   : > { %v2486_v14 = vadd.f32 %v4631_v9, %v2485_v10  ;;  %v4637_v34 = vadd.f32 %v2353_v27, %v1326_v28 }
 0x1f1   : > { %v2487_v50 = vadd.f32 %v4637_v34, %v2486_v14 }
 0x1f3   : > { %v2488_v6 = vadd.f32 %v4629_v63, %v2487_v50  ;;  %v3469_v3 = vpop.f32.mrb[12].mxu0 }
 0x1f4   : > { %v4641_v23 = vadd.f32 %v3469_v3, %v3299_v39  ;;  %v2366_v44 = vpop.f32.mrb[13].mxu0 }
 0x1f5   : > { %v4643_v19 = vadd.f32 %v2366_v44, %v1339_v41  ;;  %v2489_v52 = vadd.f32 %v4634_v0, %v2488_v6  ;;  %v3470_v21 = vpop.f32.mrb[14].mxu0 }
 0x1f6   : > { %v4646_v42 = vadd.f32 %v3470_v21, %v3300_v56  ;;  %v2369_v48 = vpop.f32.mrb[15].mxu0 }
 0x1f7   : > { %v2490_v5 = vadd.f32 %v4643_v19, %v2489_v52  ;;  %v4649_v46 = vadd.f32 %v2369_v48, %v1342_v24 }
 0x1f9   : > { %v2491_v57 = vadd.f32 %v4649_v46, %v2490_v5 }
 0x1fa   : > { %v3337_v13 = vpop.f32.mrb[16].mxu1 }
 0x1fb   : > { %v2492_v31 = vadd.f32 %v4641_v23, %v2491_v57  ;;  %v3473_v47 = vpop.f32.mrb[16].mxu0  ;;  %v1565_v2 = vpop.f32.mrb[17].mxu1 }
 0x1fc   : > { %v4653_v4 = vadd.f32 %v3473_v47, %v3337_v13  ;;  %v2382_v40 = vpop.f32.mrb[17].mxu0  ;;  %v3338_v15 = vpop.f32.mrb[18].mxu1 }
 0x1fd   : > { %v4655_v33 = vadd.f32 %v2382_v40, %v1565_v2  ;;  %v2493_v35 = vadd.f32 %v4646_v42, %v2492_v31  ;;  %v3474_v36 = vpop.f32.mrb[18].mxu0  ;;  %v1568_v38 = vpop.f32.mrb[19].mxu1 }
 0x1fe   : > { %v4658_v43 = vadd.f32 %v3474_v36, %v3338_v15  ;;  %v2385_v51 = vpop.f32.mrb[19].mxu0 }
 0x1ff   : > { %v2494_v25 = vadd.f32 %v4655_v33, %v2493_v35  ;;  %v4661_v28 = vadd.f32 %v2385_v51, %v1568_v38 }
 0x201   : > { %v2495_v39 = vadd.f32 %v4661_v28, %v2494_v25 }
 0x202   : > { %v3341_v41 = vpop.f32.mrb[20].mxu1 }
 0x203   : > { %v2496_v56 = vadd.f32 %v4653_v4, %v2495_v39  ;;  %v3477_v24 = vpop.f32.mrb[20].mxu0  ;;  %v1581_v54 = vpop.f32.mrb[21].mxu1 }
 0x204   : > { %v4665_v30 = vadd.f32 %v3477_v24, %v3341_v41  ;;  %v2398_v62 = vpop.f32.mrb[21].mxu0  ;;  %v3342_v29 = vpop.f32.mrb[22].mxu1 }
 0x205   : > { %v3510_v12 = vadd.f32 %v2398_v62, %v1581_v54  ;;  %v2497_v59 = vadd.f32 %v4658_v43, %v2496_v56  ;;  %v3478_v55 = vpop.f32.mrb[22].mxu0  ;;  %v1584_v17 = vpop.f32.mrb[23].mxu1 }
 0x206   : > { %v3511_v16 = vadd.f32 %v3478_v55, %v3342_v29  ;;  %v2401_v11 = vpop.f32.mrb[23].mxu0 }
 0x207   : > { %v2498_v7 = vadd.f32 %v3510_v12, %v2497_v59  ;;  %v3512_v58 = vadd.f32 %v2401_v11, %v1584_v17 }
 0x209   : > { %v2499_v61 = vadd.f32 %v3512_v58, %v2498_v7 }
 0x20a   : > { %v3345_v45 = vpop.f32.mrb[24].mxu1 }
 0x20b   : > { %v2500_v8 = vadd.f32 %v4665_v30, %v2499_v61  ;;  %v3481_v1 = vpop.f32.mrb[24].mxu0  ;;  %v1597_v10 = vpop.f32.mrb[25].mxu1 }
 0x20c   : > { %v3513_v53 = vadd.f32 %v3481_v1, %v3345_v45  ;;  %v2414_v27 = vpop.f32.mrb[25].mxu0  ;;  %v3346_v14 = vpop.f32.mrb[26].mxu1 }
 0x20d   : > { %v3514_v50 = vadd.f32 %v2414_v27, %v1597_v10  ;;  %v2501_v6 = vadd.f32 %v3511_v16, %v2500_v8  ;;  %v3482_v3 = vpop.f32.mrb[26].mxu0  ;;  %v1600_v44 = vpop.f32.mrb[27].mxu1 }
 0x20e   : > { %v3515_v52 = vadd.f32 %v3482_v3, %v3346_v14  ;;  %v2417_v21 = vpop.f32.mrb[27].mxu0 }
 0x20f   : > { %v2502_v48 = vadd.f32 %v3514_v50, %v2501_v6  ;;  %v3516_v5 = vadd.f32 %v2417_v21, %v1600_v44 }
 0x211   : > { %v2503_v57 = vadd.f32 %v3516_v5, %v2502_v48 }
 0x212   : > { %v3349_v13 = vpop.f32.mrb[28].mxu1 }
 0x213   : > { %v2504_v31 = vadd.f32 %v3513_v53, %v2503_v57  ;;  %v3485_v47 = vpop.f32.mrb[28].mxu0  ;;  %v1613_v2 = vpop.f32.mrb[29].mxu1 }
 0x214   : > { %v3517_v40 = vadd.f32 %v3485_v47, %v3349_v13  ;;  %v2430_v15 = vpop.f32.mrb[29].mxu0  ;;  %v3350_v35 = vpop.f32.mrb[30].mxu1 }
 0x215   : > { %v3518_v36 = vadd.f32 %v2430_v15, %v1613_v2  ;;  %v2505_v38 = vadd.f32 %v3515_v52, %v2504_v31  ;;  %v3486_v51 = vpop.f32.mrb[30].mxu0  ;;  %v1616_v25 = vpop.f32.mrb[31].mxu1 }
 0x216   : > { %v3519_v39 = vadd.f32 %v3486_v51, %v3350_v35  ;;  %v2433_v41 = vpop.f32.mrb[31].mxu0 }
 0x217   : > { %v2506_v56 = vadd.f32 %v3518_v36, %v2505_v38  ;;  %v3520_v24 = vadd.f32 %v2433_v41, %v1616_v25 }
 0x219   : > { %v2507_v54 = vadd.f32 %v3520_v24, %v2506_v56 }
 0x21b   : > { %v2508_v62 = vadd.f32 %v3517_v40, %v2507_v54 }
 0x21d   : > { %v2509_v29 = vadd.f32 %v3519_v39, %v2508_v62 }
 0x21f   : > { %v2510_v59 = vrot.slane %v2509_v29, 4 }
 0x221   : > { %v2511_v55 = vadd.f32 %v2510_v59, %v2509_v29 }
 0x223   : > { %v2512_v17 = vrot.slane %v2511_v55, 2 }
 0x225   : > { %v2513_v11 = vadd.f32 %v2512_v17, %v2511_v55 }
 0x227   : > { %v2514_v7 = vrot.slane %v2513_v11, 1 }
 0x229   : > { %v2515_v61 = vadd.f32 %v2514_v7, %v2513_v11 }
 0x22b   : > { %v2517_v45 = vmul.f32 0.00390625, %v2515_v61 }
 0x22d   : > { %v4670_v8 = vsub.f32 %v4631_v9, %v2517_v45  ;;  %v4673_v1 = vsub.f32 %v4637_v34, %v2517_v45  ;;  %v4676_v10 = vsub.f32 %v4629_v63, %v2517_v45  ;;  %v4679_v27 = vsub.f32 %v4634_v0, %v2517_v45 }
 0x22e   : > { %v4682_v14 = vsub.f32 %v4643_v19, %v2517_v45  ;;  %v4685_v6 = vsub.f32 %v4649_v46, %v2517_v45  ;;  %v4688_v3 = vsub.f32 %v4641_v23, %v2517_v45  ;;  %v4691_v9 = vsub.f32 %v4646_v42, %v2517_v45 }
 0x22f   : > { %v4694_v34 = vsub.f32 %v4655_v33, %v2517_v45  ;;  %v4697_v63 = vsub.f32 %v4661_v28, %v2517_v45  ;;  %v4700_v0 = vsub.f32 %v4653_v4, %v2517_v45  ;;  %v4703_v19 = vsub.f32 %v4658_v43, %v2517_v45 }
 0x230   : > { %v4705_v46 = vsub.f32 %v3510_v12, %v2517_v45  ;;  %v4707_v44 = vsub.f32 %v3512_v58, %v2517_v45  ;;  %v4710_v23 = vsub.f32 %v4665_v30, %v2517_v45  ;;  %v4712_v42 = vsub.f32 %v3511_v16, %v2517_v45 }
 0x231   : > { %v4714_v33 = vsub.f32 %v3514_v50, %v2517_v45  ;;  %v4716_v21 = vsub.f32 %v3516_v5, %v2517_v45  ;;  %v4718_v28 = vsub.f32 %v3513_v53, %v2517_v45  ;;  %v4720_v4 = vsub.f32 %v3515_v52, %v2517_v45 }
 0x232   : > { %v4722_v48 = vsub.f32 %v3518_v36, %v2517_v45  ;;  %v4724_v43 = vsub.f32 %v3520_v24, %v2517_v45  ;;  %v4726_v12 = vsub.f32 %v3517_v40, %v2517_v45  ;;  %v4728_v58 = vsub.f32 %v3519_v39, %v2517_v45 }
 0x233   : > { %v4731_v30 = vsub.f32 %v4608_v49, %v2517_v45  ;;  %v4734_v16 = vsub.f32 %v4612_v37, %v2517_v45  ;;  %v4737_v50 = vsub.f32 %v4606_v26, %v2517_v45  ;;  %v4744_v5 = vsub.f32 %v4610_v22, %v2517_v45 }
 0x234   : > { %v4747_v57 = vsub.f32 %v4619_v18, %v2517_v45  ;;  %v4752_v13 = vsub.f32 %v4625_v32, %v2517_v45  ;;  %v4757_v47 = vsub.f32 %v4617_v20, %v2517_v45  ;;  %v4762_v18 = vsub.f32 %v4622_v60, %v2517_v45 }
 0x235   : > { %v2550_v53 = vmul.f32 %v4731_v30, %v4731_v30  ;;  %v2551_v52 = vmul.f32 %v4734_v16, %v4734_v16  ;;  %v2552_v49 = vmul.f32 %v4737_v50, %v4737_v50  ;;  %v2553_v26 = vmul.f32 %v4744_v5, %v4744_v5 }
 0x236   : > { %v2554_v22 = vmul.f32 %v4747_v57, %v4747_v57  ;;  %v2555_v40 = vmul.f32 %v4752_v13, %v4752_v13  ;;  %v2556_v32 = vmul.f32 %v4757_v47, %v4757_v47  ;;  %v2557_v36 = vmul.f32 %v4762_v18, %v4762_v18 }
 0x237   : > { %v2582_v37 = vadd.f32 %v2551_v52, %v2550_v53  ;;  %v2558_v38 = vmul.f32 %v4670_v8, %v4670_v8  ;;  %v2559_v60 = vmul.f32 %v4673_v1, %v4673_v1  ;;  %v2560_v39 = vmul.f32 %v4676_v10, %v4676_v10 }
 0x238   : > { %v2561_v56 = vmul.f32 %v4679_v27, %v4679_v27  ;;  %v2562_v54 = vmul.f32 %v4682_v14, %v4682_v14  ;;  %v2563_v29 = vmul.f32 %v4685_v6, %v4685_v6  ;;  %v2564_v55 = vmul.f32 %v4688_v3, %v4688_v3 }
 0x239   : > { %v2583_v31 = vadd.f32 %v2582_v37, %v2552_v49  ;;  %v2565_v11 = vmul.f32 %v4691_v9, %v4691_v9  ;;  %v2566_v61 = vmul.f32 %v4694_v34, %v4694_v34  ;;  %v2567_v53 = vmul.f32 %v4697_v63, %v4697_v63 }
 0x23a   : > { %v2568_v49 = vmul.f32 %v4700_v0, %v4700_v0 }
 0x23b   : > { %v2584_v2 = vadd.f32 %v2583_v31, %v2553_v26  ;;  %v2569_v26 = vmul.f32 %v4703_v19, %v4703_v19 }
 0x23d   : > { %v2585_v15 = vadd.f32 %v2584_v2, %v2554_v22  ;;  %v2570_v22 = vmul.f32 %v4705_v46, %v4705_v46 }
 0x23f   : > { %v2586_v35 = vadd.f32 %v2585_v15, %v2555_v40  ;;  %v2571_v40 = vmul.f32 %v4707_v44, %v4707_v44 }
 0x241   : > { %v2587_v20 = vadd.f32 %v2586_v35, %v2556_v32  ;;  %v2572_v32 = vmul.f32 %v4710_v23, %v4710_v23 }
 0x243   : > { %v2588_v51 = vadd.f32 %v2587_v20, %v2557_v36  ;;  %v2573_v36 = vmul.f32 %v4712_v42, %v4712_v42 }
 0x245   : > { %v2589_v25 = vadd.f32 %v2588_v51, %v2558_v38  ;;  %v2574_v38 = vmul.f32 %v4714_v33, %v4714_v33 }
 0x247   : > { %v2590_v41 = vadd.f32 %v2589_v25, %v2559_v60  ;;  %v2575_v60 = vmul.f32 %v4716_v21, %v4716_v21 }
 0x249   : > { %v2591_v24 = vadd.f32 %v2590_v41, %v2560_v39  ;;  %v2576_v39 = vmul.f32 %v4718_v28, %v4718_v28 }
 0x24b   : > { %v2592_v62 = vadd.f32 %v2591_v24, %v2561_v56  ;;  %v2577_v56 = vmul.f32 %v4720_v4, %v4720_v4 }
 0x24d   : > { %v2593_v59 = vadd.f32 %v2592_v62, %v2562_v54  ;;  %v2578_v54 = vmul.f32 %v4722_v48, %v4722_v48 }
 0x24f   : > { %v2594_v17 = vadd.f32 %v2593_v59, %v2563_v29  ;;  %v2579_v29 = vmul.f32 %v4724_v43, %v4724_v43 }
 0x251   : > { %v2595_v7 = vadd.f32 %v2594_v17, %v2564_v55  ;;  %v2580_v55 = vmul.f32 %v4726_v12, %v4726_v12 }
 0x253   : > { %v2596_v45 = vadd.f32 %v2595_v7, %v2565_v11  ;;  %v2581_v11 = vmul.f32 %v4728_v58, %v4728_v58 }
 0x255   : > { %v2597_v52 = vadd.f32 %v2596_v45, %v2566_v61 }
 0x257   : > { %v2598_v37 = vadd.f32 %v2597_v52, %v2567_v53 }
 0x259   : > { %v2599_v31 = vadd.f32 %v2598_v37, %v2568_v49 }
 0x25b   : > { %v2600_v2 = vadd.f32 %v2599_v31, %v2569_v26 }
 0x25d   : > { %v2601_v15 = vadd.f32 %v2600_v2, %v2570_v22 }
 0x25f   : > { %v2602_v35 = vadd.f32 %v2601_v15, %v2571_v40  ;;  %v4822_v40 = vld [vmem:[%s5052_s3] ss:$0 sm:$0xff] }
 0x261   : > { %v2603_v20 = vadd.f32 %v2602_v35, %v2572_v32 }
 0x263   : > { %v2604_v51 = vadd.f32 %v2603_v20, %v2573_v36  ;;  %v4831_v20 = vld [vmem:[%s5053_s4] ss:$0 sm:$0xff] }
 0x265   : > { %v2605_v25 = vadd.f32 %v2604_v51, %v2574_v38 }
 0x267   : > { %v2606_v41 = vadd.f32 %v2605_v25, %v2575_v60 }
 0x269   : > { %v2607_v24 = vadd.f32 %v2606_v41, %v2576_v39 }
 0x26b   : > { %v2608_v62 = vadd.f32 %v2607_v24, %v2577_v56 }
 0x26d   : > { %v2609_v59 = vadd.f32 %v2608_v62, %v2578_v54 }
 0x26f   : > { %v2610_v17 = vadd.f32 %v2609_v59, %v2579_v29 }
 0x271   : > { %v2611_v7 = vadd.f32 %v2610_v17, %v2580_v55 }
 0x273   : > { %v2612_v61 = vadd.f32 %v2611_v7, %v2581_v11 }
 0x275   : > { %v2613_v45 = vrot.slane %v2612_v61, 4 }
 0x277   : > { %v2614_v53 = vadd.f32 %v2613_v45, %v2612_v61 }
 0x279   : > { %v2615_v52 = vrot.slane %v2614_v53, 2 }
 0x27b   : > { %v2616_v49 = vadd.f32 %v2615_v52, %v2614_v53 }
 0x27d   : > { %v2617_v37 = vrot.slane %v2616_v49, 1 }
 0x27f   : > { %v2618_v26 = vadd.f32 %v2617_v37, %v2616_v49 }
 0x281   : > { %v2619_v31 = vmul.f32 0.00390625, %v2618_v26 }
 0x283   : > { %v2620_v22 = vadd.f32 1e-05, %v2619_v31 }
 0x285   : > { %3797 = vrsqrt.f32 %v2620_v22 }
 0x28f   : > { %v3798_v2 = vpop.eup %3797 }
 0x290   : > { %v2651_v15 = vmul.f32 %v3798_v2, %v4724_v43  ;;  %v2622_v32 = vmul.f32 %v3798_v2, %v4731_v30  ;;  %v2623_v35 = vmul.f32 %v3798_v2, %v4734_v16  ;;  %v2624_v36 = vmul.f32 %v3798_v2, %v4737_v50 }
 0x291   : > { %v2625_v38 = vmul.f32 %v3798_v2, %v4744_v5  ;;  %v2626_v51 = vmul.f32 %v3798_v2, %v4747_v57  ;;  %v2627_v60 = vmul.f32 %v3798_v2, %v4752_v13  ;;  %v2628_v25 = vmul.f32 %v3798_v2, %v4757_v47 }
 0x292   : > { %v2689_v43 = vmul.f32 %v4822_v40, %v2651_v15  ;;  %v2629_v30 = vmul.f32 %v3798_v2, %v4762_v18  ;;  %v2630_v16 = vmul.f32 %v3798_v2, %v4670_v8  ;;  %v2631_v50 = vmul.f32 %v3798_v2, %v4673_v1 }
 0x293   : > { %v2632_v39 = vmul.f32 %v3798_v2, %v4676_v10  ;;  %v2633_v5 = vmul.f32 %v3798_v2, %v4679_v27  ;;  %v2634_v57 = vmul.f32 %v3798_v2, %v4682_v14  ;;  %v2635_v13 = vmul.f32 %v3798_v2, %v4685_v6 }
 0x294   : > { %v2727_v47 = vadd.f32 %v4831_v20, %v2689_v43  ;;  %v2636_v41 = vmul.f32 %v3798_v2, %v4688_v3  ;;  %v2637_v56 = vmul.f32 %v3798_v2, %v4691_v9  ;;  %v2638_v18 = vmul.f32 %v3798_v2, %v4694_v34 }
 0x295   : > { %v2639_v8 = vmul.f32 %v3798_v2, %v4697_v63  ;;  %v2640_v1 = vmul.f32 %v3798_v2, %v4700_v0  ;;  %v2641_v10 = vmul.f32 %v3798_v2, %v4703_v19  ;;  %v2642_v27 = vmul.f32 %v3798_v2, %v4705_v46 }
 0x296   : > { %v2759_v24 = vmax.f32 %v2727_v47, 0.0  ;;  %v2643_v14 = vmul.f32 %v3798_v2, %v4707_v44  ;;  %v2644_v6 = vmul.f32 %v3798_v2, %v4710_v23  ;;  %v2645_v54 = vmul.f32 %v3798_v2, %v4712_v42 }
 0x297   : > { %v2646_v3 = vmul.f32 %v3798_v2, %v4714_v33  ;;  %v2647_v9 = vmul.f32 %v3798_v2, %v4716_v21  ;;  %v2648_v34 = vmul.f32 %v3798_v2, %v4718_v28  ;;  %v2649_v63 = vmul.f32 %v3798_v2, %v4720_v4 }
 0x298   : > { %2791 = vst [vmem:[%s4862_s16 + $0xe8] sm:$0xff] %v2759_v24  ;;  %v2650_v0 = vmul.f32 %v3798_v2, %v4722_v48  ;;  %v2652_v19 = vmul.f32 %v3798_v2, %v4726_v12  ;;  %v2653_v46 = vmul.f32 %v3798_v2, %v4728_v58  ;;  %v2660_v44 = vmul.f32 %v4822_v40, %v2622_v32 }
 0x299   : > { %v2661_v23 = vmul.f32 %v4822_v40, %v2623_v35  ;;  %v2662_v42 = vmul.f32 %v4822_v40, %v2624_v36  ;;  %v2663_v33 = vmul.f32 %v4822_v40, %v2625_v38  ;;  %v2664_v21 = vmul.f32 %v4822_v40, %v2626_v51 }
 0x29a   : > { %v2665_v28 = vmul.f32 %v4822_v40, %v2627_v60  ;;  %v2666_v4 = vmul.f32 %v4822_v40, %v2628_v25  ;;  %v2667_v48 = vmul.f32 %v4822_v40, %v2629_v30  ;;  %v2668_v12 = vmul.f32 %v4822_v40, %v2630_v16 }
 0x29b   : > { %v2669_v58 = vmul.f32 %v4822_v40, %v2631_v50  ;;  %v2670_v62 = vmul.f32 %v4822_v40, %v2632_v39  ;;  %v2671_v29 = vmul.f32 %v4822_v40, %v2633_v5  ;;  %v2672_v59 = vmul.f32 %v4822_v40, %v2634_v57 }
 0x29c   : > { %v2673_v55 = vmul.f32 %v4822_v40, %v2635_v13  ;;  %v2674_v17 = vmul.f32 %v4822_v40, %v2636_v41  ;;  %v2675_v11 = vmul.f32 %v4822_v40, %v2637_v56  ;;  %v2676_v7 = vmul.f32 %v4822_v40, %v2638_v18 }
 0x29d   : > { %v2677_v61 = vmul.f32 %v4822_v40, %v2639_v8  ;;  %v2678_v45 = vmul.f32 %v4822_v40, %v2640_v1  ;;  %v2679_v53 = vmul.f32 %v4822_v40, %v2641_v10  ;;  %v2680_v52 = vmul.f32 %v4822_v40, %v2642_v27 }
 0x29e   : > { %v2681_v49 = vmul.f32 %v4822_v40, %v2643_v14  ;;  %v2682_v37 = vmul.f32 %v4822_v40, %v2644_v6  ;;  %v2683_v26 = vmul.f32 %v4822_v40, %v2645_v54  ;;  %v2684_v31 = vmul.f32 %v4822_v40, %v2646_v3 }
 0x29f   : > { %v2685_v22 = vmul.f32 %v4822_v40, %v2647_v9  ;;  %v2686_v2 = vmul.f32 %v4822_v40, %v2648_v34  ;;  %v2687_v15 = vmul.f32 %v4822_v40, %v2649_v63  ;;  %v2688_v32 = vmul.f32 %v4822_v40, %v2650_v0 }
 0x2a0   : > { %v2690_v35 = vmul.f32 %v4822_v40, %v2652_v19  ;;  %v2691_v36 = vmul.f32 %v4822_v40, %v2653_v46  ;;  %v2698_v38 = vadd.f32 %v4831_v20, %v2660_v44  ;;  %v2699_v51 = vadd.f32 %v4831_v20, %v2661_v23 }
 0x2a1   : > { %v2700_v60 = vadd.f32 %v4831_v20, %v2662_v42  ;;  %v2701_v25 = vadd.f32 %v4831_v20, %v2663_v33  ;;  %v2702_v43 = vadd.f32 %v4831_v20, %v2664_v21  ;;  %v2703_v30 = vadd.f32 %v4831_v20, %v2665_v28 }
 0x2a2   : > { %v2704_v16 = vadd.f32 %v4831_v20, %v2666_v4  ;;  %v2705_v50 = vadd.f32 %v4831_v20, %v2667_v48  ;;  %v2706_v39 = vadd.f32 %v4831_v20, %v2668_v12  ;;  %v2707_v40 = vadd.f32 %v4831_v20, %v2669_v58 }
 0x2a3   : > { %v2708_v5 = vadd.f32 %v4831_v20, %v2670_v62  ;;  %v2709_v57 = vadd.f32 %v4831_v20, %v2671_v29  ;;  %v2710_v13 = vadd.f32 %v4831_v20, %v2672_v59  ;;  %v2711_v47 = vadd.f32 %v4831_v20, %v2673_v55 }
 0x2a4   : > { %v2712_v41 = vadd.f32 %v4831_v20, %v2674_v17  ;;  %v2713_v56 = vadd.f32 %v4831_v20, %v2675_v11  ;;  %v2714_v18 = vadd.f32 %v4831_v20, %v2676_v7  ;;  %v2715_v8 = vadd.f32 %v4831_v20, %v2677_v61 }
 0x2a5   : > { %v2716_v1 = vadd.f32 %v4831_v20, %v2678_v45  ;;  %v4919_v10 = vadd.f32 %v4831_v20, %v2679_v53  ;;  %v4922_v27 = vadd.f32 %v4831_v20, %v2680_v52  ;;  %v4925_v24 = vadd.f32 %v4831_v20, %v2681_v49 }
 0x2a6   : > { %v4928_v14 = vadd.f32 %v4831_v20, %v2682_v37  ;;  %v4931_v6 = vadd.f32 %v4831_v20, %v2683_v26  ;;  %v4934_v54 = vadd.f32 %v4831_v20, %v2684_v31  ;;  %v4937_v3 = vadd.f32 %v4831_v20, %v2685_v22 }
 0x2a7   : > { %v4940_v9 = vadd.f32 %v4831_v20, %v2686_v2  ;;  %v4943_v34 = vadd.f32 %v4831_v20, %v2687_v15  ;;  %v4946_v63 = vadd.f32 %v4831_v20, %v2688_v32  ;;  %v4949_v0 = vadd.f32 %v4831_v20, %v2690_v35 }
 0x2a8   : > { %v4952_v19 = vadd.f32 %v4831_v20, %v2691_v36  ;;  %v2730_v46 = vmax.f32 %v2698_v38, 0.0  ;;  %v2731_v44 = vmax.f32 %v2699_v51, 0.0  ;;  %v2732_v23 = vmax.f32 %v2700_v60, 0.0 }
 0x2a9   : > { %v2733_v42 = vmax.f32 %v2701_v25, 0.0  ;;  %v2734_v33 = vmax.f32 %v2702_v43, 0.0  ;;  %v2735_v21 = vmax.f32 %v2703_v30, 0.0  ;;  %v2736_v28 = vmax.f32 %v2704_v16, 0.0 }
 0x2aa   : > { %v2737_v4 = vmax.f32 %v2705_v50, 0.0  ;;  %v2738_v48 = vmax.f32 %v2706_v39, 0.0  ;;  %v2739_v12 = vmax.f32 %v2707_v40, 0.0  ;;  %v2740_v58 = vmax.f32 %v2708_v5, 0.0  ;;  %2762 = vst [vmem:[%s4862_s16] sm:$0xff] %v2730_v46  ;;  %2763 = vst [vmem:[%s4862_s16 + $0x8] sm:$0xff] %v2731_v44 }
 0x2ab   : > { %2764 = vst [vmem:[%s4862_s16 + $0x10] sm:$0xff] %v2732_v23  ;;  %v2741_v20 = vmax.f32 %v2709_v57, 0.0  ;;  %v2742_v62 = vmax.f32 %v2710_v13, 0.0  ;;  %v2743_v29 = vmax.f32 %v2711_v47, 0.0  ;;  %v2744_v59 = vmax.f32 %v2712_v41, 0.0  ;;  %2765 = vst [vmem:[%s4862_s16 + $0x18] sm:$0xff] %v2733_v42 }
 0x2ac   : > { %2766 = vst [vmem:[%s4862_s16 + $0x20] sm:$0xff] %v2734_v33  ;;  %2767 = vst [vmem:[%s4862_s16 + $0x28] sm:$0xff] %v2735_v21  ;;  %v2745_v55 = vmax.f32 %v2713_v56, 0.0  ;;  %v2746_v17 = vmax.f32 %v2714_v18, 0.0  ;;  %v2747_v11 = vmax.f32 %v2715_v8, 0.0  ;;  %v2748_v7 = vmax.f32 %v2716_v1, 0.0 }
 0x2ad   : > { %2768 = vst [vmem:[%s4862_s16 + $0x30] sm:$0xff] %v2736_v28  ;;  %2769 = vst [vmem:[%s4862_s16 + $0x38] sm:$0xff] %v2737_v4  ;;  %v2749_v61 = vmax.f32 %v4919_v10, 0.0  ;;  %v2750_v45 = vmax.f32 %v4922_v27, 0.0  ;;  %v2751_v53 = vmax.f32 %v4925_v24, 0.0  ;;  %v2752_v52 = vmax.f32 %v4928_v14, 0.0 }
 0x2ae   : > { %2770 = vst [vmem:[%s4862_s16 + $0x40] sm:$0xff] %v2738_v48  ;;  %2771 = vst [vmem:[%s4862_s16 + $0x48] sm:$0xff] %v2739_v12  ;;  %v2753_v49 = vmax.f32 %v4931_v6, 0.0  ;;  %v2754_v37 = vmax.f32 %v4934_v54, 0.0  ;;  %v2755_v26 = vmax.f32 %v4937_v3, 0.0  ;;  %v2756_v31 = vmax.f32 %v4940_v9, 0.0 }
 0x2af   : > { %2772 = vst [vmem:[%s4862_s16 + $0x50] sm:$0xff] %v2740_v58  ;;  %2773 = vst [vmem:[%s4862_s16 + $0x58] sm:$0xff] %v2741_v20  ;;  %v2757_v22 = vmax.f32 %v4943_v34, 0.0  ;;  %v2758_v2 = vmax.f32 %v4946_v63, 0.0  ;;  %v2760_v15 = vmax.f32 %v4949_v0, 0.0  ;;  %v2761_v32 = vmax.f32 %v4952_v19, 0.0 }
 0x2b0   : > { %2774 = vst [vmem:[%s4862_s16 + $0x60] sm:$0xff] %v2742_v62  ;;  %2775 = vst [vmem:[%s4862_s16 + $0x68] sm:$0xff] %v2743_v29 }
 0x2b1   : > { %2776 = vst [vmem:[%s4862_s16 + $0x70] sm:$0xff] %v2744_v59  ;;  %2777 = vst [vmem:[%s4862_s16 + $0x78] sm:$0xff] %v2745_v55 }
 0x2b2   : > { %2778 = vst [vmem:[%s4862_s16 + $0x80] sm:$0xff] %v2746_v17  ;;  %2779 = vst [vmem:[%s4862_s16 + $0x88] sm:$0xff] %v2747_v11 }
 0x2b3   : > { %2780 = vst [vmem:[%s4862_s16 + $0x90] sm:$0xff] %v2748_v7  ;;  %2781 = vst [vmem:[%s4862_s16 + $0x98] sm:$0xff] %v2749_v61 }
 0x2b4   : > { %2782 = vst [vmem:[%s4862_s16 + $0xa0] sm:$0xff] %v2750_v45  ;;  %2783 = vst [vmem:[%s4862_s16 + $0xa8] sm:$0xff] %v2751_v53 }
 0x2b5   : > { %2784 = vst [vmem:[%s4862_s16 + $0xb0] sm:$0xff] %v2752_v52  ;;  %2785 = vst [vmem:[%s4862_s16 + $0xb8] sm:$0xff] %v2753_v49 }
 0x2b6   : > { %2786 = vst [vmem:[%s4862_s16 + $0xc0] sm:$0xff] %v2754_v37  ;;  %2787 = vst [vmem:[%s4862_s16 + $0xc8] sm:$0xff] %v2755_v26 }
 0x2b7   : > { %2788 = vst [vmem:[%s4862_s16 + $0xd0] sm:$0xff] %v2756_v31  ;;  %2789 = vst [vmem:[%s4862_s16 + $0xd8] sm:$0xff] %v2757_v22 }
 0x2b8   : > { %2790 = vst [vmem:[%s4862_s16 + $0xe0] sm:$0xff] %v2758_v2  ;;  %2792 = vst [vmem:[%s4862_s16 + $0xf0] sm:$0xff] %v2760_v15 }
 0x2b9   : > { %2793 = vst [vmem:[%s4862_s16 + $0xf8] sm:$0xff] %v2761_v32 }
 0x2ba   : > { %3812 = shalt.err (!%p3809_p3)
}
 0x2bb   : > { %s3813_s9 = scalar_lea.hbm %s4986_s25, 4096  ;;  %s3817_s12 = scalar_lea.hbm %s5054_s5, 8192 }
 0x2bc   : > { %p3814_p4 = scmp.ne.s32.totalorder %s4986_s25, %s3813_s9  ;;  %p3818_p9 = scmp.lt.u32.totalorder %s4986_s25, %s5054_s5 }
 0x2bd   : > { %p3819_p10 = scmp.lt.u32.totalorder %s3817_s12, %s3813_s9  ;;  %p3821_p12 = scmp.lt.u32.totalorder %s3813_s9, %s4986_s25 }
 0x2be   : > { %p3815_p7 = pnand %p3814_p4, %p3934_p5 }
 0x2bf   : > { %p3820_p11 = por %p3819_p10, %p3818_p9 }
 0x2c0   : > { %p3816_p8 = pneg %p3815_p7 }
 0x2c1   : > { %p3822_p13 = por %p3821_p12, %p3820_p11 }
 0x2c3   : > { %p3823_p0 = pnand %p3822_p13, %p3816_p8 }
 0x2c5   : > { %3826 = shalt.err (!%p3823_p0)
}
 0x2c6   : > { %s3864_s15 = smov 128   ;;  %s3865_s16 = smov 8  }
 0x2c7   : > { %3756 = dma.vmem_to_hbm [thread:$0]  (%p3934_p5), %s4988_s22, 4096, %s4986_s25, %s5008_s29, %s3864_s15, %s3864_s15, %s3865_s16  }
 0x2c8 PF: > { %p3762_p1 = scmp.ge.s32.totalorder %s3861_s21, 2  ;;  %s2823_s17 = sand.u32 1, %s3849_s18  }
 0x2c9   : > { %s2824_s2 = scalar_lea.sflag [#allocation3], %s2823_s17 }
 0x2ca   : > { %p3759_p2 = pnand %p3762_p1, %p3938_p6 }
 0x2cc   : > { %3844 = dma.done.wait (!%p3759_p2), %s2824_s2, 4096  }
 0x2cd   : > { %3846 = vsyncadd (!%p3759_p2), %s2824_s2, 4294963200  ;;  %p15_p3 = scmp.ge.s32.totalorder %s3921_s23, 4   ;;  %s5061_s18 = smov %s3853_s19 }
 0x2ce   : > { %s5062_s19 = smov %s3857_s20  ;;  %s5063_s20 = smov %s3932_s26 }
 0x2cf   : > { %s5064_s21 = smov %s3921_s23  ;;  %17 = sbr.rel (!%p15_p3) target bundleno = 3 (0x3), region = 75 }
 0x2d6   :  { %2829 = vsyncpa [#allocation3], 1 }
 0x2d7   :  { %2831 = vsyncpa [#allocation3 + $0x1], 1 }

</bundles_post_ra>
